<compile_context>
chip_gen: v7x
topology: tpu7x:2x2x1
jax: 0.10.0
libtpu: 0.0.40
codegen_flags: <defaults>
</compile_context>

<pallas_src>
import jax
import jax.numpy as jnp
from jax.experimental import pallas as pl
from jax.experimental.pallas import tpu as pltpu

EPS = 1e-5
F_PAD = 128          # lane-dense activation width
OUT_DIM = 2
_VMEM = pl.BlockSpec(memory_space=pltpu.MemorySpace.VMEM)


# ---------------- in-kernel math ----------------------------------------------

def _bn_train(y, gamma, beta):
    """BatchNorm1d, training mode, one-pass scale/shift form (f32)."""
    mean = jnp.mean(y, axis=0, keepdims=True)
    mean_sq = jnp.mean(y * y, axis=0, keepdims=True)
    var = jnp.maximum(mean_sq - mean * mean, 0.0)   # clamp: guards cancellation
    scale = gamma * jax.lax.rsqrt(var + EPS)        # rsqrt rides the EUP slot
    shift = beta - mean * scale
    return y * scale + shift


def _dot(x_f32, w_bf16):
    """MXU matmul: bf16 operands, f32 accumulation."""
    return jnp.dot(x_f32.astype(jnp.bfloat16), w_bf16,
                   preferred_element_type=jnp.float32)


# ---------------- fused whole-network kernel ------------------------------------

def _resnet_sir_kernel(x_ref, w_ref, v_ref, o_ref):
    """x_ref: [B,128] f32 (cols >= input_size are zero)
       w_ref: [5,128,256] bf16 weight stack
       v_ref: [16,256]  f32 gamma/beta/mask/bias slab
       o_ref: [B,128] f32 (cols >= 2 are zero)"""

    def W(slot, half):                       # [128,128] bf16 weight view
        c = half * 128
        return w_ref[slot, :, c:c + 128]

    vec = v_ref[...]                         # 16 KiB -> 4 vregs, loaded once

    def vrow(r):                             # full 256-lane row
        return vec[r:r + 1, :]

    def vhalf(r, half):                      # 128-lane half row
        c = half * 128
        return vec[r:r + 1, c:c + 128]

    x = x_ref[...]                           # [B,128] f32

    # ---- Block 1 : 16 -> 128, projection shortcut (fused [Ws || W1] dot) ----
    y = _dot(x, w_ref[0])                    # [B,256]: cols 0:128 shortcut, 128:256 main
    y = _bn_train(y, vrow(0), vrow(1))
    res = y[:, 0:128]                        # BN_s output (128-aligned view)
    h = jnp.maximum(y[:, 128:256], 0.0)      # ReLU(BN1 output)
    z = _bn_train(_dot(h, W(1, 0)), vhalf(2, 0), vhalf(2, 1))
    h = jnp.maximum(z + res, 0.0)            # [B,128]

    # ---- Block 2 : 128 -> 128, identity shortcut ----
    z = jnp.maximum(_bn_train(_dot(h, W(1, 1)), vhalf(3, 0), vhalf(3, 1)), 0.0)
    z = _bn_train(_dot(z, W(2, 0)), vhalf(4, 0), vhalf(4, 1))
    h = jnp.maximum(z + h, 0.0)

    # ---- Block 3 : 128 -> 64 (zero-padded to 128 lanes), projection ----
    # Fused dot: cols 0:64 = shortcut, 64:128 = main.  Second weight has its
    # rows placed at 64:128 and zero rows elsewhere, so feeding relu(y) is
    # exact; the residual is recovered with a precomputed lane mask.
    y = _bn_train(_dot(h, W(2, 1)), vhalf(5, 0), vhalf(5, 1))
    z = _bn_train(_dot(jnp.maximum(y, 0.0), W(3, 0)), vhalf(6, 0), vhalf(6, 1))
    h = jnp.maximum(z + y * vhalf(9, 0), 0.0)          # valid cols 0:64, rest 0

    # ---- Block 4 : 64 -> 32 (zero-padded), projection ----
    y = _bn_train(_dot(h, W(3, 1)), vhalf(7, 0), vhalf(7, 1))
    z = _bn_train(_dot(jnp.maximum(y, 0.0), W(4, 0)), vhalf(8, 0), vhalf(8, 1))
    h = jnp.maximum(z + y * vhalf(9, 1), 0.0)          # valid cols 0:32, rest 0

    # ---- Final Linear 32 -> 2 (padded to 128 output lanes, unmasked store) ----
    o_ref[...] = _dot(h, W(4, 1)) + vhalf(10, 0)


# ---------------- wrapper -------------------------------------------------------

def resnet_sir_forward(x, w_slab, v_slab):
    b, n_in = x.shape
    x_pad = jnp.zeros((b, F_PAD), jnp.float32).at[:, :n_in].set(x)
    out_pad = pl.pallas_call(
        _resnet_sir_kernel,
        out_shape=jax.ShapeDtypeStruct((b, F_PAD), jnp.float32),
        in_specs=[_VMEM, _VMEM, _VMEM],
        out_specs=_VMEM,
        cost_estimate=pl.CostEstimate(
            flops=2_621_440,            # 9 padded matmuls, M=8
            transcendentals=1_152,      # rsqrt lanes across 9 BNs
            bytes_accessed=352_256,     # weight + vector slabs + x + out
        ),
        # NOTE: single grid point -- the whole problem (B=8, <=256 lanes,
        # ~336 KiB resident) fits VMEM on v5e/v6e/v7x.  If batch were scaled
        # up, add grid=(B//TILE_B,) with dimension_semantics=("parallel",),
        # constant index_maps for the slabs, and size TILE_B against v7x's
        # 64 MiB VMEM via pltpu.CompilerParams(vmem_limit_bytes=...).
    )(x_pad, w_slab, v_slab)
    return out_pad[:, :OUT_DIM]


# ---------------- parameters (PyTorch-equivalent) + packing ---------------------

def _linear_weight(key, fan_in, fan_out):
    bound = fan_in ** -0.5
    return jax.random.uniform(key, (fan_in, fan_out), jnp.float32, -bound, bound)


def make_block_params(key, in_ch, out_ch):
    k1, k2, k3 = jax.random.split(key, 3)
    p = dict(
        w1=_linear_weight(k1, in_ch, out_ch),
        g1=jnp.ones((out_ch,), jnp.float32), be1=jnp.zeros((out_ch,), jnp.float32),
        w2=_linear_weight(k2, out_ch, out_ch),
        g2=jnp.ones((out_ch,), jnp.float32), be2=jnp.zeros((out_ch,), jnp.float32),
    )
    if in_ch != out_ch:
        p.update(
            ws=_linear_weight(k3, in_ch, out_ch),
            gs=jnp.ones((out_ch,), jnp.float32), bes=jnp.zeros((out_ch,), jnp.float32),
        )
    return p


def make_resnet_sir_params(key, input_size):
    dims = [(input_size, 128), (128, 128), (128, 64), (64, 32)]
    keys = jax.random.split(key, len(dims) + 2)
    blocks = [make_block_params(k, i, o) for k, (i, o) in zip(keys[:4], dims)]
    w_out = _linear_weight(keys[-2], 32, OUT_DIM)
    bound = 32 ** -0.5
    b_out = jax.random.uniform(keys[-1], (OUT_DIM,), jnp.float32, -bound, bound)
    return dict(blocks=blocks, w_out=w_out, b_out=b_out)


def pack_params(params):
    """Pack all weights into one bf16 [5,128,256] stack and all per-feature
    vectors (gamma/beta/mask/bias) into one f32 [16,256] lane-dense slab."""
    b1, b2, b3, b4 = params["blocks"]
    z = lambda n: jnp.zeros((n,), jnp.float32)

    def pad2(w, rows=128, cols=128):
        r, c = w.shape
        return jnp.pad(w, ((0, rows - r), (0, cols - c)))

    # slot 0: block1 fused first layer [Ws || W1], rows padded 16 -> 128.
    slot0 = pad2(jnp.concatenate([b1["ws"], b1["w1"]], axis=1), 128, 256)
    # slot 1: block1 W2 | block2 W1
    slot1 = jnp.concatenate([b1["w2"], b2["w1"]], axis=1)
    # slot 2: block2 W2 | block3 fused [Ws || W1]
    slot2 = jnp.concatenate(
        [b2["w2"], jnp.concatenate([b3["ws"], b3["w1"]], axis=1)], axis=1)
    # slot 3: block3 W2 (rows at 64:128, cols 0:64) | block4 fused (rows 0:64, cols 0:64)
    w2p3 = jnp.zeros((128, 128), jnp.float32).at[64:128, 0:64].set(b3["w2"])
    wc4 = jnp.zeros((128, 128), jnp.float32).at[0:64, 0:64].set(
        jnp.concatenate([b4["ws"], b4["w1"]], axis=1))
    slot3 = jnp.concatenate([w2p3, wc4], axis=1)
    # slot 4: block4 W2 (rows 32:64, cols 0:32) | final W_out (rows 0:32, cols 0:2)
    w2p4 = jnp.zeros((128, 128), jnp.float32).at[32:64, 0:32].set(b4["w2"])
    wout = jnp.zeros((128, 128), jnp.float32).at[0:32, 0:OUT_DIM].set(params["w_out"])
    slot4 = jnp.concatenate([w2p4, wout], axis=1)

    w_slab = jnp.stack([slot0, slot1, slot2, slot3, slot4]).astype(jnp.bfloat16)

    rows = [
        jnp.concatenate([b1["gs"], b1["g1"]]),                              # 0 gcat1
        jnp.concatenate([b1["bes"], b1["be1"]]),                            # 1 bcat1
        jnp.concatenate([b1["g2"], b1["be2"]]),                             # 2
        jnp.concatenate([b2["g1"], b2["be1"]]),                             # 3
        jnp.concatenate([b2["g2"], b2["be2"]]),                             # 4
        jnp.concatenate([b3["gs"], b3["g1"], b3["bes"], b3["be1"]]),        # 5
        jnp.concatenate([b3["g2"], z(64), b3["be2"], z(64)]),               # 6
        jnp.concatenate([b4["gs"], b4["g1"], z(64),
                         b4["bes"], b4["be1"], z(64)]),                     # 7
        jnp.concatenate([b4["g2"], z(96), b4["be2"], z(96)]),               # 8
        jnp.concatenate([jnp.ones((64,)), z(64), jnp.ones((32,)), z(96)]),  # 9 masks
        jnp.concatenate([params["b_out"], z(126), z(128)]),                 # 10 bias
    ]
    rows += [z(256)] * (16 - len(rows))
    v_slab = jnp.stack(rows).astype(jnp.float32)
    return w_slab, v_slab


if __name__ == "__main__":
    key = jax.random.PRNGKey(0)
    k_param, k_x = jax.random.split(key)

    INPUT_SIZE = 16
    BATCH = 8                      # BatchNorm1d training mode needs batch > 1

    params = make_resnet_sir_params(k_param, INPUT_SIZE)
    w_slab, v_slab = pack_params(params)
    x = jax.random.normal(k_x, (BATCH, INPUT_SIZE), jnp.float32)

    fwd = jax.jit(resnet_sir_forward)
    out = fwd(x, w_slab, v_slab)
    jax.block_until_ready(out)
    assert out.shape == (BATCH, OUT_DIM) and out.dtype == jnp.float32
    assert bool(jnp.all(jnp.isfinite(out)))
    print("KERNEL_OK")
</pallas_src>

<mosaic_0001>
module attributes {stable_mosaic.version = 11 : i64} {
  func.func @_resnet_sir_kernel(%arg0: memref<8x128xf32, #tpu.memory_space<vmem>>, %arg1: memref<5x128x256xbf16, #tpu.memory_space<vmem>>, %arg2: memref<16x256xf32, #tpu.memory_space<vmem>>, %arg3: memref<8x128xf32, #tpu.memory_space<vmem>>) attributes {dimension_semantics = [], scalar_prefetch = 0 : i64, scratch_operands = 0 : i64, tpu.core_type = #tpu.core_type<tc>} {
    %c0 = arith.constant 0 : index
    %c0_0 = arith.constant 0 : index
    %0 = vector.load %arg2[%c0, %c0_0] : memref<16x256xf32, #tpu.memory_space<vmem>>, vector<16x256xf32>
    %c0_1 = arith.constant 0 : index
    %c0_2 = arith.constant 0 : index
    %1 = vector.load %arg0[%c0_1, %c0_2] : memref<8x128xf32, #tpu.memory_space<vmem>>, vector<8x128xf32>
    %c0_3 = arith.constant 0 : index
    %c0_4 = arith.constant 0 : index
    %c0_5 = arith.constant 0 : index
    %2 = vector.load %arg1[%c0_3, %c0_4, %c0_5] : memref<5x128x256xbf16, #tpu.memory_space<vmem>>, vector<1x128x256xbf16>
    %3 = vector.shape_cast %2 : vector<1x128x256xbf16> to vector<128x256xbf16>
    %4 = arith.truncf %1 : vector<8x128xf32> to vector<8x128xbf16>
    %cst = arith.constant dense<0.000000e+00> : vector<8x256xf32>
    %5 = tpu.matmul %4, %3, %cst {dimension_numbers = #tpu.dot_dimension_numbers<[1], [0], [0], [1], [0, 0, 1, 1], [], []>} : vector<8x128xbf16>, vector<128x256xbf16>, vector<8x256xf32> -> vector<8x256xf32>
    %6 = vector.extract_strided_slice %0 {offsets = [0, 0], sizes = [1, 256], strides = [1, 1]} : vector<16x256xf32> to vector<1x256xf32>
    %7 = vector.extract_strided_slice %0 {offsets = [1, 0], sizes = [1, 256], strides = [1, 1]} : vector<16x256xf32> to vector<1x256xf32>
    %cst_6 = arith.constant dense<0.000000e+00> : vector<256xf32>
    %8 = vector.multi_reduction <add>, %5, %cst_6 [0] : vector<8x256xf32> to vector<256xf32>
    %9 = vector.shape_cast %8 : vector<256xf32> to vector<1x256xf32>
    %cst_7 = arith.constant 8.000000e+00 : f32
    %10 = vector.broadcast %cst_7 : f32 to vector<1x256xf32>
    %11 = arith.divf %9, %10 : vector<1x256xf32>
    %12 = arith.mulf %5, %5 : vector<8x256xf32>
    %cst_8 = arith.constant dense<0.000000e+00> : vector<256xf32>
    %13 = vector.multi_reduction <add>, %12, %cst_8 [0] : vector<8x256xf32> to vector<256xf32>
    %14 = vector.shape_cast %13 : vector<256xf32> to vector<1x256xf32>
    %cst_9 = arith.constant 8.000000e+00 : f32
    %15 = vector.broadcast %cst_9 : f32 to vector<1x256xf32>
    %16 = arith.divf %14, %15 : vector<1x256xf32>
    %17 = arith.mulf %11, %11 : vector<1x256xf32>
    %18 = arith.subf %16, %17 : vector<1x256xf32>
    %cst_10 = arith.constant 0.000000e+00 : f32
    %19 = vector.broadcast %cst_10 : f32 to vector<1x256xf32>
    %20 = arith.maximumf %18, %19 : vector<1x256xf32>
    %cst_11 = arith.constant 9.99999974E-6 : f32
    %21 = vector.broadcast %cst_11 : f32 to vector<1x256xf32>
    %22 = arith.addf %20, %21 : vector<1x256xf32>
    %23 = math.rsqrt %22 : vector<1x256xf32>
    %24 = arith.mulf %6, %23 : vector<1x256xf32>
    %25 = arith.mulf %11, %24 : vector<1x256xf32>
    %26 = arith.subf %7, %25 : vector<1x256xf32>
    %27 = vector.broadcast %24 : vector<1x256xf32> to vector<8x256xf32>
    %28 = arith.mulf %5, %27 : vector<8x256xf32>
    %29 = vector.broadcast %26 : vector<1x256xf32> to vector<8x256xf32>
    %30 = arith.addf %28, %29 : vector<8x256xf32>
    %31 = vector.extract_strided_slice %30 {offsets = [0, 0], sizes = [8, 128], strides = [1, 1]} : vector<8x256xf32> to vector<8x128xf32>
    %32 = vector.extract_strided_slice %30 {offsets = [0, 128], sizes = [8, 128], strides = [1, 1]} : vector<8x256xf32> to vector<8x128xf32>
    %cst_12 = arith.constant 0.000000e+00 : f32
    %33 = vector.broadcast %cst_12 : f32 to vector<8x128xf32>
    %34 = arith.maximumf %32, %33 : vector<8x128xf32>
    %c1 = arith.constant 1 : index
    %c0_13 = arith.constant 0 : index
    %c0_14 = arith.constant 0 : index
    %35 = vector.load %arg1[%c1, %c0_13, %c0_14] : memref<5x128x256xbf16, #tpu.memory_space<vmem>>, vector<1x128x128xbf16>
    %36 = vector.shape_cast %35 : vector<1x128x128xbf16> to vector<128x128xbf16>
    %37 = arith.truncf %34 : vector<8x128xf32> to vector<8x128xbf16>
    %cst_15 = arith.constant dense<0.000000e+00> : vector<8x128xf32>
    %38 = tpu.matmul %37, %36, %cst_15 {dimension_numbers = #tpu.dot_dimension_numbers<[1], [0], [0], [1], [0, 0, 1, 1], [], []>} : vector<8x128xbf16>, vector<128x128xbf16>, vector<8x128xf32> -> vector<8x128xf32>
    %39 = vector.extract_strided_slice %0 {offsets = [2, 0], sizes = [1, 128], strides = [1, 1]} : vector<16x256xf32> to vector<1x128xf32>
    %40 = vector.extract_strided_slice %0 {offsets = [2, 128], sizes = [1, 128], strides = [1, 1]} : vector<16x256xf32> to vector<1x128xf32>
    %cst_16 = arith.constant dense<0.000000e+00> : vector<128xf32>
    %41 = vector.multi_reduction <add>, %38, %cst_16 [0] : vector<8x128xf32> to vector<128xf32>
    %42 = vector.shape_cast %41 : vector<128xf32> to vector<1x128xf32>
    %cst_17 = arith.constant 8.000000e+00 : f32
    %43 = vector.broadcast %cst_17 : f32 to vector<1x128xf32>
    %44 = arith.divf %42, %43 : vector<1x128xf32>
    %45 = arith.mulf %38, %38 : vector<8x128xf32>
    %cst_18 = arith.constant dense<0.000000e+00> : vector<128xf32>
    %46 = vector.multi_reduction <add>, %45, %cst_18 [0] : vector<8x128xf32> to vector<128xf32>
    %47 = vector.shape_cast %46 : vector<128xf32> to vector<1x128xf32>
    %cst_19 = arith.constant 8.000000e+00 : f32
    %48 = vector.broadcast %cst_19 : f32 to vector<1x128xf32>
    %49 = arith.divf %47, %48 : vector<1x128xf32>
    %50 = arith.mulf %44, %44 : vector<1x128xf32>
    %51 = arith.subf %49, %50 : vector<1x128xf32>
    %cst_20 = arith.constant 0.000000e+00 : f32
    %52 = vector.broadcast %cst_20 : f32 to vector<1x128xf32>
    %53 = arith.maximumf %51, %52 : vector<1x128xf32>
    %cst_21 = arith.constant 9.99999974E-6 : f32
    %54 = vector.broadcast %cst_21 : f32 to vector<1x128xf32>
    %55 = arith.addf %53, %54 : vector<1x128xf32>
    %56 = math.rsqrt %55 : vector<1x128xf32>
    %57 = arith.mulf %39, %56 : vector<1x128xf32>
    %58 = arith.mulf %44, %57 : vector<1x128xf32>
    %59 = arith.subf %40, %58 : vector<1x128xf32>
    %60 = vector.broadcast %57 : vector<1x128xf32> to vector<8x128xf32>
    %61 = arith.mulf %38, %60 : vector<8x128xf32>
    %62 = vector.broadcast %59 : vector<1x128xf32> to vector<8x128xf32>
    %63 = arith.addf %61, %62 : vector<8x128xf32>
    %64 = arith.addf %63, %31 : vector<8x128xf32>
    %cst_22 = arith.constant 0.000000e+00 : f32
    %65 = vector.broadcast %cst_22 : f32 to vector<8x128xf32>
    %66 = arith.maximumf %64, %65 : vector<8x128xf32>
    %c1_23 = arith.constant 1 : index
    %c0_24 = arith.constant 0 : index
    %c128 = arith.constant 128 : index
    %67 = vector.load %arg1[%c1_23, %c0_24, %c128] : memref<5x128x256xbf16, #tpu.memory_space<vmem>>, vector<1x128x128xbf16>
    %68 = vector.shape_cast %67 : vector<1x128x128xbf16> to vector<128x128xbf16>
    %69 = arith.truncf %66 : vector<8x128xf32> to vector<8x128xbf16>
    %cst_25 = arith.constant dense<0.000000e+00> : vector<8x128xf32>
    %70 = tpu.matmul %69, %68, %cst_25 {dimension_numbers = #tpu.dot_dimension_numbers<[1], [0], [0], [1], [0, 0, 1, 1], [], []>} : vector<8x128xbf16>, vector<128x128xbf16>, vector<8x128xf32> -> vector<8x128xf32>
    %71 = vector.extract_strided_slice %0 {offsets = [3, 0], sizes = [1, 128], strides = [1, 1]} : vector<16x256xf32> to vector<1x128xf32>
    %72 = vector.extract_strided_slice %0 {offsets = [3, 128], sizes = [1, 128], strides = [1, 1]} : vector<16x256xf32> to vector<1x128xf32>
    %cst_26 = arith.constant dense<0.000000e+00> : vector<128xf32>
    %73 = vector.multi_reduction <add>, %70, %cst_26 [0] : vector<8x128xf32> to vector<128xf32>
    %74 = vector.shape_cast %73 : vector<128xf32> to vector<1x128xf32>
    %cst_27 = arith.constant 8.000000e+00 : f32
    %75 = vector.broadcast %cst_27 : f32 to vector<1x128xf32>
    %76 = arith.divf %74, %75 : vector<1x128xf32>
    %77 = arith.mulf %70, %70 : vector<8x128xf32>
    %cst_28 = arith.constant dense<0.000000e+00> : vector<128xf32>
    %78 = vector.multi_reduction <add>, %77, %cst_28 [0] : vector<8x128xf32> to vector<128xf32>
    %79 = vector.shape_cast %78 : vector<128xf32> to vector<1x128xf32>
    %cst_29 = arith.constant 8.000000e+00 : f32
    %80 = vector.broadcast %cst_29 : f32 to vector<1x128xf32>
    %81 = arith.divf %79, %80 : vector<1x128xf32>
    %82 = arith.mulf %76, %76 : vector<1x128xf32>
    %83 = arith.subf %81, %82 : vector<1x128xf32>
    %cst_30 = arith.constant 0.000000e+00 : f32
    %84 = vector.broadcast %cst_30 : f32 to vector<1x128xf32>
    %85 = arith.maximumf %83, %84 : vector<1x128xf32>
    %cst_31 = arith.constant 9.99999974E-6 : f32
    %86 = vector.broadcast %cst_31 : f32 to vector<1x128xf32>
    %87 = arith.addf %85, %86 : vector<1x128xf32>
    %88 = math.rsqrt %87 : vector<1x128xf32>
    %89 = arith.mulf %71, %88 : vector<1x128xf32>
    %90 = arith.mulf %76, %89 : vector<1x128xf32>
    %91 = arith.subf %72, %90 : vector<1x128xf32>
    %92 = vector.broadcast %89 : vector<1x128xf32> to vector<8x128xf32>
    %93 = arith.mulf %70, %92 : vector<8x128xf32>
    %94 = vector.broadcast %91 : vector<1x128xf32> to vector<8x128xf32>
    %95 = arith.addf %93, %94 : vector<8x128xf32>
    %cst_32 = arith.constant 0.000000e+00 : f32
    %96 = vector.broadcast %cst_32 : f32 to vector<8x128xf32>
    %97 = arith.maximumf %95, %96 : vector<8x128xf32>
    %c2 = arith.constant 2 : index
    %c0_33 = arith.constant 0 : index
    %c0_34 = arith.constant 0 : index
    %98 = vector.load %arg1[%c2, %c0_33, %c0_34] : memref<5x128x256xbf16, #tpu.memory_space<vmem>>, vector<1x128x128xbf16>
    %99 = vector.shape_cast %98 : vector<1x128x128xbf16> to vector<128x128xbf16>
    %100 = arith.truncf %97 : vector<8x128xf32> to vector<8x128xbf16>
    %cst_35 = arith.constant dense<0.000000e+00> : vector<8x128xf32>
    %101 = tpu.matmul %100, %99, %cst_35 {dimension_numbers = #tpu.dot_dimension_numbers<[1], [0], [0], [1], [0, 0, 1, 1], [], []>} : vector<8x128xbf16>, vector<128x128xbf16>, vector<8x128xf32> -> vector<8x128xf32>
    %102 = vector.extract_strided_slice %0 {offsets = [4, 0], sizes = [1, 128], strides = [1, 1]} : vector<16x256xf32> to vector<1x128xf32>
    %103 = vector.extract_strided_slice %0 {offsets = [4, 128], sizes = [1, 128], strides = [1, 1]} : vector<16x256xf32> to vector<1x128xf32>
    %cst_36 = arith.constant dense<0.000000e+00> : vector<128xf32>
    %104 = vector.multi_reduction <add>, %101, %cst_36 [0] : vector<8x128xf32> to vector<128xf32>
    %105 = vector.shape_cast %104 : vector<128xf32> to vector<1x128xf32>
    %cst_37 = arith.constant 8.000000e+00 : f32
    %106 = vector.broadcast %cst_37 : f32 to vector<1x128xf32>
    %107 = arith.divf %105, %106 : vector<1x128xf32>
    %108 = arith.mulf %101, %101 : vector<8x128xf32>
    %cst_38 = arith.constant dense<0.000000e+00> : vector<128xf32>
    %109 = vector.multi_reduction <add>, %108, %cst_38 [0] : vector<8x128xf32> to vector<128xf32>
    %110 = vector.shape_cast %109 : vector<128xf32> to vector<1x128xf32>
    %cst_39 = arith.constant 8.000000e+00 : f32
    %111 = vector.broadcast %cst_39 : f32 to vector<1x128xf32>
    %112 = arith.divf %110, %111 : vector<1x128xf32>
    %113 = arith.mulf %107, %107 : vector<1x128xf32>
    %114 = arith.subf %112, %113 : vector<1x128xf32>
    %cst_40 = arith.constant 0.000000e+00 : f32
    %115 = vector.broadcast %cst_40 : f32 to vector<1x128xf32>
    %116 = arith.maximumf %114, %115 : vector<1x128xf32>
    %cst_41 = arith.constant 9.99999974E-6 : f32
    %117 = vector.broadcast %cst_41 : f32 to vector<1x128xf32>
    %118 = arith.addf %116, %117 : vector<1x128xf32>
    %119 = math.rsqrt %118 : vector<1x128xf32>
    %120 = arith.mulf %102, %119 : vector<1x128xf32>
    %121 = arith.mulf %107, %120 : vector<1x128xf32>
    %122 = arith.subf %103, %121 : vector<1x128xf32>
    %123 = vector.broadcast %120 : vector<1x128xf32> to vector<8x128xf32>
    %124 = arith.mulf %101, %123 : vector<8x128xf32>
    %125 = vector.broadcast %122 : vector<1x128xf32> to vector<8x128xf32>
    %126 = arith.addf %124, %125 : vector<8x128xf32>
    %127 = arith.addf %126, %66 : vector<8x128xf32>
    %cst_42 = arith.constant 0.000000e+00 : f32
    %128 = vector.broadcast %cst_42 : f32 to vector<8x128xf32>
    %129 = arith.maximumf %127, %128 : vector<8x128xf32>
    %c2_43 = arith.constant 2 : index
    %c0_44 = arith.constant 0 : index
    %c128_45 = arith.constant 128 : index
    %130 = vector.load %arg1[%c2_43, %c0_44, %c128_45] : memref<5x128x256xbf16, #tpu.memory_space<vmem>>, vector<1x128x128xbf16>
    %131 = vector.shape_cast %130 : vector<1x128x128xbf16> to vector<128x128xbf16>
    %132 = arith.truncf %129 : vector<8x128xf32> to vector<8x128xbf16>
    %cst_46 = arith.constant dense<0.000000e+00> : vector<8x128xf32>
    %133 = tpu.matmul %132, %131, %cst_46 {dimension_numbers = #tpu.dot_dimension_numbers<[1], [0], [0], [1], [0, 0, 1, 1], [], []>} : vector<8x128xbf16>, vector<128x128xbf16>, vector<8x128xf32> -> vector<8x128xf32>
    %134 = vector.extract_strided_slice %0 {offsets = [5, 0], sizes = [1, 128], strides = [1, 1]} : vector<16x256xf32> to vector<1x128xf32>
    %135 = vector.extract_strided_slice %0 {offsets = [5, 128], sizes = [1, 128], strides = [1, 1]} : vector<16x256xf32> to vector<1x128xf32>
    %cst_47 = arith.constant dense<0.000000e+00> : vector<128xf32>
    %136 = vector.multi_reduction <add>, %133, %cst_47 [0] : vector<8x128xf32> to vector<128xf32>
    %137 = vector.shape_cast %136 : vector<128xf32> to vector<1x128xf32>
    %cst_48 = arith.constant 8.000000e+00 : f32
    %138 = vector.broadcast %cst_48 : f32 to vector<1x128xf32>
    %139 = arith.divf %137, %138 : vector<1x128xf32>
    %140 = arith.mulf %133, %133 : vector<8x128xf32>
    %cst_49 = arith.constant dense<0.000000e+00> : vector<128xf32>
    %141 = vector.multi_reduction <add>, %140, %cst_49 [0] : vector<8x128xf32> to vector<128xf32>
    %142 = vector.shape_cast %141 : vector<128xf32> to vector<1x128xf32>
    %cst_50 = arith.constant 8.000000e+00 : f32
    %143 = vector.broadcast %cst_50 : f32 to vector<1x128xf32>
    %144 = arith.divf %142, %143 : vector<1x128xf32>
    %145 = arith.mulf %139, %139 : vector<1x128xf32>
    %146 = arith.subf %144, %145 : vector<1x128xf32>
    %cst_51 = arith.constant 0.000000e+00 : f32
    %147 = vector.broadcast %cst_51 : f32 to vector<1x128xf32>
    %148 = arith.maximumf %146, %147 : vector<1x128xf32>
    %cst_52 = arith.constant 9.99999974E-6 : f32
    %149 = vector.broadcast %cst_52 : f32 to vector<1x128xf32>
    %150 = arith.addf %148, %149 : vector<1x128xf32>
    %151 = math.rsqrt %150 : vector<1x128xf32>
    %152 = arith.mulf %134, %151 : vector<1x128xf32>
    %153 = arith.mulf %139, %152 : vector<1x128xf32>
    %154 = arith.subf %135, %153 : vector<1x128xf32>
    %155 = vector.broadcast %152 : vector<1x128xf32> to vector<8x128xf32>
    %156 = arith.mulf %133, %155 : vector<8x128xf32>
    %157 = vector.broadcast %154 : vector<1x128xf32> to vector<8x128xf32>
    %158 = arith.addf %156, %157 : vector<8x128xf32>
    %cst_53 = arith.constant 0.000000e+00 : f32
    %159 = vector.broadcast %cst_53 : f32 to vector<8x128xf32>
    %160 = arith.maximumf %158, %159 : vector<8x128xf32>
    %c3 = arith.constant 3 : index
    %c0_54 = arith.constant 0 : index
    %c0_55 = arith.constant 0 : index
    %161 = vector.load %arg1[%c3, %c0_54, %c0_55] : memref<5x128x256xbf16, #tpu.memory_space<vmem>>, vector<1x128x128xbf16>
    %162 = vector.shape_cast %161 : vector<1x128x128xbf16> to vector<128x128xbf16>
    %163 = arith.truncf %160 : vector<8x128xf32> to vector<8x128xbf16>
    %cst_56 = arith.constant dense<0.000000e+00> : vector<8x128xf32>
    %164 = tpu.matmul %163, %162, %cst_56 {dimension_numbers = #tpu.dot_dimension_numbers<[1], [0], [0], [1], [0, 0, 1, 1], [], []>} : vector<8x128xbf16>, vector<128x128xbf16>, vector<8x128xf32> -> vector<8x128xf32>
    %165 = vector.extract_strided_slice %0 {offsets = [6, 0], sizes = [1, 128], strides = [1, 1]} : vector<16x256xf32> to vector<1x128xf32>
    %166 = vector.extract_strided_slice %0 {offsets = [6, 128], sizes = [1, 128], strides = [1, 1]} : vector<16x256xf32> to vector<1x128xf32>
    %cst_57 = arith.constant dense<0.000000e+00> : vector<128xf32>
    %167 = vector.multi_reduction <add>, %164, %cst_57 [0] : vector<8x128xf32> to vector<128xf32>
    %168 = vector.shape_cast %167 : vector<128xf32> to vector<1x128xf32>
    %cst_58 = arith.constant 8.000000e+00 : f32
    %169 = vector.broadcast %cst_58 : f32 to vector<1x128xf32>
    %170 = arith.divf %168, %169 : vector<1x128xf32>
    %171 = arith.mulf %164, %164 : vector<8x128xf32>
    %cst_59 = arith.constant dense<0.000000e+00> : vector<128xf32>
    %172 = vector.multi_reduction <add>, %171, %cst_59 [0] : vector<8x128xf32> to vector<128xf32>
    %173 = vector.shape_cast %172 : vector<128xf32> to vector<1x128xf32>
    %cst_60 = arith.constant 8.000000e+00 : f32
    %174 = vector.broadcast %cst_60 : f32 to vector<1x128xf32>
    %175 = arith.divf %173, %174 : vector<1x128xf32>
    %176 = arith.mulf %170, %170 : vector<1x128xf32>
    %177 = arith.subf %175, %176 : vector<1x128xf32>
    %cst_61 = arith.constant 0.000000e+00 : f32
    %178 = vector.broadcast %cst_61 : f32 to vector<1x128xf32>
    %179 = arith.maximumf %177, %178 : vector<1x128xf32>
    %cst_62 = arith.constant 9.99999974E-6 : f32
    %180 = vector.broadcast %cst_62 : f32 to vector<1x128xf32>
    %181 = arith.addf %179, %180 : vector<1x128xf32>
    %182 = math.rsqrt %181 : vector<1x128xf32>
    %183 = arith.mulf %165, %182 : vector<1x128xf32>
    %184 = arith.mulf %170, %183 : vector<1x128xf32>
    %185 = arith.subf %166, %184 : vector<1x128xf32>
    %186 = vector.broadcast %183 : vector<1x128xf32> to vector<8x128xf32>
    %187 = arith.mulf %164, %186 : vector<8x128xf32>
    %188 = vector.broadcast %185 : vector<1x128xf32> to vector<8x128xf32>
    %189 = arith.addf %187, %188 : vector<8x128xf32>
    %190 = vector.extract_strided_slice %0 {offsets = [9, 0], sizes = [1, 128], strides = [1, 1]} : vector<16x256xf32> to vector<1x128xf32>
    %191 = vector.broadcast %190 : vector<1x128xf32> to vector<8x128xf32>
    %192 = arith.mulf %158, %191 : vector<8x128xf32>
    %193 = arith.addf %189, %192 : vector<8x128xf32>
    %cst_63 = arith.constant 0.000000e+00 : f32
    %194 = vector.broadcast %cst_63 : f32 to vector<8x128xf32>
    %195 = arith.maximumf %193, %194 : vector<8x128xf32>
    %c3_64 = arith.constant 3 : index
    %c0_65 = arith.constant 0 : index
    %c128_66 = arith.constant 128 : index
    %196 = vector.load %arg1[%c3_64, %c0_65, %c128_66] : memref<5x128x256xbf16, #tpu.memory_space<vmem>>, vector<1x128x128xbf16>
    %197 = vector.shape_cast %196 : vector<1x128x128xbf16> to vector<128x128xbf16>
    %198 = arith.truncf %195 : vector<8x128xf32> to vector<8x128xbf16>
    %cst_67 = arith.constant dense<0.000000e+00> : vector<8x128xf32>
    %199 = tpu.matmul %198, %197, %cst_67 {dimension_numbers = #tpu.dot_dimension_numbers<[1], [0], [0], [1], [0, 0, 1, 1], [], []>} : vector<8x128xbf16>, vector<128x128xbf16>, vector<8x128xf32> -> vector<8x128xf32>
    %200 = vector.extract_strided_slice %0 {offsets = [7, 0], sizes = [1, 128], strides = [1, 1]} : vector<16x256xf32> to vector<1x128xf32>
    %201 = vector.extract_strided_slice %0 {offsets = [7, 128], sizes = [1, 128], strides = [1, 1]} : vector<16x256xf32> to vector<1x128xf32>
    %cst_68 = arith.constant dense<0.000000e+00> : vector<128xf32>
    %202 = vector.multi_reduction <add>, %199, %cst_68 [0] : vector<8x128xf32> to vector<128xf32>
    %203 = vector.shape_cast %202 : vector<128xf32> to vector<1x128xf32>
    %cst_69 = arith.constant 8.000000e+00 : f32
    %204 = vector.broadcast %cst_69 : f32 to vector<1x128xf32>
    %205 = arith.divf %203, %204 : vector<1x128xf32>
    %206 = arith.mulf %199, %199 : vector<8x128xf32>
    %cst_70 = arith.constant dense<0.000000e+00> : vector<128xf32>
    %207 = vector.multi_reduction <add>, %206, %cst_70 [0] : vector<8x128xf32> to vector<128xf32>
    %208 = vector.shape_cast %207 : vector<128xf32> to vector<1x128xf32>
    %cst_71 = arith.constant 8.000000e+00 : f32
    %209 = vector.broadcast %cst_71 : f32 to vector<1x128xf32>
    %210 = arith.divf %208, %209 : vector<1x128xf32>
    %211 = arith.mulf %205, %205 : vector<1x128xf32>
    %212 = arith.subf %210, %211 : vector<1x128xf32>
    %cst_72 = arith.constant 0.000000e+00 : f32
    %213 = vector.broadcast %cst_72 : f32 to vector<1x128xf32>
    %214 = arith.maximumf %212, %213 : vector<1x128xf32>
    %cst_73 = arith.constant 9.99999974E-6 : f32
    %215 = vector.broadcast %cst_73 : f32 to vector<1x128xf32>
    %216 = arith.addf %214, %215 : vector<1x128xf32>
    %217 = math.rsqrt %216 : vector<1x128xf32>
    %218 = arith.mulf %200, %217 : vector<1x128xf32>
    %219 = arith.mulf %205, %218 : vector<1x128xf32>
    %220 = arith.subf %201, %219 : vector<1x128xf32>
    %221 = vector.broadcast %218 : vector<1x128xf32> to vector<8x128xf32>
    %222 = arith.mulf %199, %221 : vector<8x128xf32>
    %223 = vector.broadcast %220 : vector<1x128xf32> to vector<8x128xf32>
    %224 = arith.addf %222, %223 : vector<8x128xf32>
    %cst_74 = arith.constant 0.000000e+00 : f32
    %225 = vector.broadcast %cst_74 : f32 to vector<8x128xf32>
    %226 = arith.maximumf %224, %225 : vector<8x128xf32>
    %c4 = arith.constant 4 : index
    %c0_75 = arith.constant 0 : index
    %c0_76 = arith.constant 0 : index
    %227 = vector.load %arg1[%c4, %c0_75, %c0_76] : memref<5x128x256xbf16, #tpu.memory_space<vmem>>, vector<1x128x128xbf16>
    %228 = vector.shape_cast %227 : vector<1x128x128xbf16> to vector<128x128xbf16>
    %229 = arith.truncf %226 : vector<8x128xf32> to vector<8x128xbf16>
    %cst_77 = arith.constant dense<0.000000e+00> : vector<8x128xf32>
    %230 = tpu.matmul %229, %228, %cst_77 {dimension_numbers = #tpu.dot_dimension_numbers<[1], [0], [0], [1], [0, 0, 1, 1], [], []>} : vector<8x128xbf16>, vector<128x128xbf16>, vector<8x128xf32> -> vector<8x128xf32>
    %231 = vector.extract_strided_slice %0 {offsets = [8, 0], sizes = [1, 128], strides = [1, 1]} : vector<16x256xf32> to vector<1x128xf32>
    %232 = vector.extract_strided_slice %0 {offsets = [8, 128], sizes = [1, 128], strides = [1, 1]} : vector<16x256xf32> to vector<1x128xf32>
    %cst_78 = arith.constant dense<0.000000e+00> : vector<128xf32>
    %233 = vector.multi_reduction <add>, %230, %cst_78 [0] : vector<8x128xf32> to vector<128xf32>
    %234 = vector.shape_cast %233 : vector<128xf32> to vector<1x128xf32>
    %cst_79 = arith.constant 8.000000e+00 : f32
    %235 = vector.broadcast %cst_79 : f32 to vector<1x128xf32>
    %236 = arith.divf %234, %235 : vector<1x128xf32>
    %237 = arith.mulf %230, %230 : vector<8x128xf32>
    %cst_80 = arith.constant dense<0.000000e+00> : vector<128xf32>
    %238 = vector.multi_reduction <add>, %237, %cst_80 [0] : vector<8x128xf32> to vector<128xf32>
    %239 = vector.shape_cast %238 : vector<128xf32> to vector<1x128xf32>
    %cst_81 = arith.constant 8.000000e+00 : f32
    %240 = vector.broadcast %cst_81 : f32 to vector<1x128xf32>
    %241 = arith.divf %239, %240 : vector<1x128xf32>
    %242 = arith.mulf %236, %236 : vector<1x128xf32>
    %243 = arith.subf %241, %242 : vector<1x128xf32>
    %cst_82 = arith.constant 0.000000e+00 : f32
    %244 = vector.broadcast %cst_82 : f32 to vector<1x128xf32>
    %245 = arith.maximumf %243, %244 : vector<1x128xf32>
    %cst_83 = arith.constant 9.99999974E-6 : f32
    %246 = vector.broadcast %cst_83 : f32 to vector<1x128xf32>
    %247 = arith.addf %245, %246 : vector<1x128xf32>
    %248 = math.rsqrt %247 : vector<1x128xf32>
    %249 = arith.mulf %231, %248 : vector<1x128xf32>
    %250 = arith.mulf %236, %249 : vector<1x128xf32>
    %251 = arith.subf %232, %250 : vector<1x128xf32>
    %252 = vector.broadcast %249 : vector<1x128xf32> to vector<8x128xf32>
    %253 = arith.mulf %230, %252 : vector<8x128xf32>
    %254 = vector.broadcast %251 : vector<1x128xf32> to vector<8x128xf32>
    %255 = arith.addf %253, %254 : vector<8x128xf32>
    %256 = vector.extract_strided_slice %0 {offsets = [9, 128], sizes = [1, 128], strides = [1, 1]} : vector<16x256xf32> to vector<1x128xf32>
    %257 = vector.broadcast %256 : vector<1x128xf32> to vector<8x128xf32>
    %258 = arith.mulf %224, %257 : vector<8x128xf32>
    %259 = arith.addf %255, %258 : vector<8x128xf32>
    %cst_84 = arith.constant 0.000000e+00 : f32
    %260 = vector.broadcast %cst_84 : f32 to vector<8x128xf32>
    %261 = arith.maximumf %259, %260 : vector<8x128xf32>
    %c4_85 = arith.constant 4 : index
    %c0_86 = arith.constant 0 : index
    %c128_87 = arith.constant 128 : index
    %262 = vector.load %arg1[%c4_85, %c0_86, %c128_87] : memref<5x128x256xbf16, #tpu.memory_space<vmem>>, vector<1x128x128xbf16>
    %263 = vector.shape_cast %262 : vector<1x128x128xbf16> to vector<128x128xbf16>
    %264 = arith.truncf %261 : vector<8x128xf32> to vector<8x128xbf16>
    %cst_88 = arith.constant dense<0.000000e+00> : vector<8x128xf32>
    %265 = tpu.matmul %264, %263, %cst_88 {dimension_numbers = #tpu.dot_dimension_numbers<[1], [0], [0], [1], [0, 0, 1, 1], [], []>} : vector<8x128xbf16>, vector<128x128xbf16>, vector<8x128xf32> -> vector<8x128xf32>
    %266 = vector.extract_strided_slice %0 {offsets = [10, 0], sizes = [1, 128], strides = [1, 1]} : vector<16x256xf32> to vector<1x128xf32>
    %267 = vector.broadcast %266 : vector<1x128xf32> to vector<8x128xf32>
    %268 = arith.addf %265, %267 : vector<8x128xf32>
    %c0_89 = arith.constant 0 : index
    %c0_90 = arith.constant 0 : index
    %269 = vector.load %arg3[%c0_89, %c0_90] : memref<8x128xf32, #tpu.memory_space<vmem>>, vector<8x128xf32>
    tpu.vector_store %arg3[%c0_89, %c0_90], %268 {strides = array<i32>} : memref<8x128xf32, #tpu.memory_space<vmem>>, vector<8x128xf32>,
    return
  }
}

</mosaic_0001>

<bundles_post_ra>
// kernel: resnet_sir_forward.1
= control target key start
LH: loop header
LB: loop body
LE: loop exit
PB: predicated region body
PF: predicated region fallthrough
CT: control target
= control target key end

     0   :  { %8 = vsyncpa [#allocation3], 0  ;;  %s1800_s12 = smov [#allocation2]   ;;  %s2004_s0 = inlined_call_operand.vmem [shape: f32[8,128], index: 0, kind: input, shape index: {}]   ;;  %s2005_s1 = inlined_call_operand.hbm [shape: bf16[5,128,256], index: 1, kind: input, shape index: {}]   ;;  %s2006_s2 = inlined_call_operand.vmem [shape: f32[16,256], index: 2, kind: input, shape index: {}]   ;;  %s2007_s3 = inlined_call_operand.vmem [shape: f32[8,128], index: 3, kind: output, shape index: {}]  }
   0x1   :  { %s16_s13 = sshll.u32 %s1800_s12, 4  ;;  %s1776_s16 = scalar_lea.hbm %s2005_s1, 10240  ;;  %s17_s13 = int_to_ptr.vmem [resolvable:$true] %s16_s13 }
   0x2   :  { %p1777_p0 = scmp.ne.s32.totalorder %s2005_s1, %s1776_s16  ;;  %p1780_p1 = scmp.lt.u32.totalorder %s1776_s16, %s2005_s1 }
   0x4   :  { %p1782_p2 = pnand %p1780_p1, %p1777_p0 }
   0x6   :  { %1785 = shalt.err (!%p1782_p2)
}
   0x7   :  { %s1786_s21 = scalar_lea.vmem %s17_s13, 10240  ;;  %p1791_p4 = scmp.lt.s32.totalorder %s17_s13, %s17_s13 }
   0x8   :  { %p1787_p3 = scmp.ne.s32.totalorder %s17_s13, %s1786_s21  ;;  %p1792_p5 = scmp.lt.s32.totalorder %s1786_s21, %s1786_s21 }
   0xa   :  { %p1793_p6 = por %p1792_p5, %p1791_p4 }
   0xc   :  { %p1794_p7 = pnand %p1793_p6, %p1787_p3 }
   0xe   :  { %1797 = shalt.err (!%p1794_p7)
}
   0xf   :  { %s1801_s22 = smov 128   ;;  %s1802_s23 = smov 8  }
  0x10   :  { %22 = dma.hbm_to_vmem [thread:$0]  %s2005_s1, 10240, %s17_s13, [#allocation3], %s1801_s22, %s1801_s22, %s1802_s23  }
  0x11   :  { %1798 = dma.done.wait [#allocation3], 10240  }
  0x12   :  { %1799 = vsyncadd [#allocation3], 4294957056  ;;  %v1803_v0 = vmov 0   ;;  %v1670_v1 = vld [vmem:[#allocation2 + $0x4] ss:$8 sps:$4 sm:$0xff]   ;;  %v1804_v20 = vmov 0.0   ;;  %v225_v51 = vlaneseq }
  0x13   :  { %163 = vmatprep.mubr.bf16.mxu0 %v1803_v0  ;;  %v1672_v2 = vld [vmem:[#allocation2] ss:$8 sps:$4 sm:$0xff]   ;;  %131 = vmatprep.subr.bf16.mxu0 %v1670_v1  ;;  %v1673_v3 = vld [vmem:[#allocation2 + $0x14] ss:$8 sps:$4 sm:$0xff]   ;;  %v1675_v4 = vld [vmem:[#allocation2 + $0x10] ss:$8 sps:$4 sm:$0xff]  }
  0x14   :  { %132 = vmatpush1.bf16.msra.mxu0 %v1672_v2  ;;  %v1676_v5 = vld [vmem:[#allocation2 + $0x24] ss:$8 sps:$4 sm:$0xff]   ;;  %v1678_v6 = vld [vmem:[#allocation2 + $0x20] ss:$8 sps:$4 sm:$0xff]   ;;  %v1679_v7 = vld [vmem:[#allocation2 + $0x34] ss:$8 sps:$4 sm:$0xff]   ;;  %1504 = vmatprep.subr.bf16.mxu1 %v1804_v20 }
  0x15   :  { %133 = vmatprep.subr.bf16.mxu0 %v1673_v3  ;;  %v1681_v8 = vld [vmem:[#allocation2 + $0x30] ss:$8 sps:$4 sm:$0xff]   ;;  %v1682_v9 = vld [vmem:[#allocation2 + $0x44] ss:$8 sps:$4 sm:$0xff]   ;;  %v1684_v10 = vld [vmem:[#allocation2 + $0x40] ss:$8 sps:$4 sm:$0xff]  }
  0x16   :  { %v1685_v11 = vld [vmem:[#allocation2 + $0x54] ss:$8 sps:$4 sm:$0xff]   ;;  %v1687_v12 = vld [vmem:[#allocation2 + $0x50] ss:$8 sps:$4 sm:$0xff]   ;;  %v1688_v13 = vld [vmem:[#allocation2 + $0x64] ss:$8 sps:$4 sm:$0xff]  }
  0x17   :  { %v1690_v14 = vld [vmem:[#allocation2 + $0x60] ss:$8 sps:$4 sm:$0xff]   ;;  %v1691_v15 = vld [vmem:[#allocation2 + $0x74] ss:$8 sps:$4 sm:$0xff]   ;;  %v1693_v16 = vld [vmem:[#allocation2 + $0x70] ss:$8 sps:$4 sm:$0xff]  }
  0x18   :  { %134 = vmatpush1.bf16.msra.mxu0 %v1675_v4  ;;  %v33_v17 = vld [vmem:[%s2004_s0] sm:$0xff]  ;;  %v1695_v21 = vld [vmem:[#allocation2 + $0x90] ss:$8 sps:$4 sm:$0xff]   ;;  %vm1805_vm0 = vmmov 0   ;;  %v1857_v52 = vshrl.u32 %v225_v51, 7  ;;  %v1862_v53 = vld [vmem:[%s2006_s2 + $0x8] sm:$0xff] }
  0x19   :  { %135 = vmatprep.subr.bf16.mxu0 %v1676_v5  ;;  %v50_v18 = vpack.c.bf16 %v33_v17, %v33_v17  ;;  %v1694_v19 = vld [vmem:[#allocation2 + $0x80] ss:$8 sps:$4 sm:$0xff]   ;;  %v1697_v23 = vld [vmem:[#allocation2 + $0xb0] ss:$8 sps:$4 sm:$0xff]   ;;  %1520 = vmatprep.mubr.msk.bf16.mxu1 %vm1805_vm0, %v1804_v20  ;;  %v1702_v3 = vld [vmem:[#allocation2 + $0x84] ss:$8 sps:$4 sm:$0xff]  }
  0x1a   :  { %1505 = vmatpush3.bf16.msra.mxu1 %v1694_v19  ;;  %v1696_v22 = vld [vmem:[#allocation2 + $0xa0] ss:$8 sps:$4 sm:$0xff]   ;;  %v1699_v25 = vld [vmem:[#allocation2 + $0xd0] ss:$8 sps:$4 sm:$0xff]   ;;  %v1865_v55 = vsub.s32 0, %v1857_v52  ;;  %v1869_v58 = vsub.s32 1, %v1857_v52 }
  0x1b   :  { %1506 = vmatprep.subr.bf16.mxu1 %v1804_v20  ;;  %v1698_v24 = vld [vmem:[#allocation2 + $0xc0] ss:$8 sps:$4 sm:$0xff]   ;;  %v1701_v27 = vld [vmem:[#allocation2 + $0xf0] ss:$8 sps:$4 sm:$0xff]   ;;  %v1703_v4 = vld [vmem:[#allocation2 + $0x94] ss:$8 sps:$4 sm:$0xff]  }
  0x1c   :  { %136 = vmatpush1.bf16.msra.mxu0 %v1678_v6  ;;  %v1700_v26 = vld [vmem:[#allocation2 + $0xe0] ss:$8 sps:$4 sm:$0xff]   ;;  %v1704_v5 = vld [vmem:[#allocation2 + $0xa4] ss:$8 sps:$4 sm:$0xff]   ;;  %v1705_v6 = vld [vmem:[#allocation2 + $0xb4] ss:$8 sps:$4 sm:$0xff]  }
  0x1d   :  { %137 = vmatprep.subr.bf16.mxu0 %v1679_v7  ;;  %v1706_v7 = vld [vmem:[#allocation2 + $0xc4] ss:$8 sps:$4 sm:$0xff]  }
  0x1e   :  { %1507 = vmatpush3.bf16.msra.mxu1 %v1695_v21 }
  0x1f   :  { %1508 = vmatprep.subr.bf16.mxu1 %v1804_v20 }
  0x20   :  { %138 = vmatpush1.bf16.msra.mxu0 %v1681_v8  ;;  %v1707_v8 = vld [vmem:[#allocation2 + $0xd4] ss:$8 sps:$4 sm:$0xff]  }
  0x21   :  { %139 = vmatprep.subr.bf16.mxu0 %v1682_v9  ;;  %v1708_v9 = vld [vmem:[#allocation2 + $0xe4] ss:$8 sps:$4 sm:$0xff]  }
  0x22   :  { %1509 = vmatpush3.bf16.msra.mxu1 %v1696_v22 }
  0x23   :  { %1510 = vmatprep.subr.bf16.mxu1 %v1804_v20 }
  0x24   :  { %140 = vmatpush1.bf16.msra.mxu0 %v1684_v10  ;;  %v1709_v10 = vld [vmem:[#allocation2 + $0xf4] ss:$8 sps:$4 sm:$0xff]  }
  0x25   :  { %141 = vmatprep.subr.bf16.mxu0 %v1685_v11 }
  0x26   :  { %1511 = vmatpush3.bf16.msra.mxu1 %v1697_v23 }
  0x27   :  { %1512 = vmatprep.subr.bf16.mxu1 %v1804_v20 }
  0x28   :  { %142 = vmatpush1.bf16.msra.mxu0 %v1687_v12 }
  0x29   :  { %143 = vmatprep.subr.bf16.mxu0 %v1688_v13 }
  0x2a   :  { %1513 = vmatpush3.bf16.msra.mxu1 %v1698_v24 }
  0x2b   :  { %1514 = vmatprep.subr.bf16.mxu1 %v1804_v20 }
  0x2c   :  { %144 = vmatpush1.bf16.msra.mxu0 %v1690_v14 }
  0x2d   :  { %145 = vmatprep.subr.bf16.mxu0 %v1691_v15 }
  0x2e   :  { %1515 = vmatpush3.bf16.msra.mxu1 %v1699_v25 }
  0x2f   :  { %1516 = vmatprep.subr.bf16.mxu1 %v1804_v20 }
  0x30   :  { %146 = vmatpush1.bf16.msra.mxu0 %v1693_v16 }
  0x31   :  { %1524 = vmatprep.subr.bf16.mxu0 %v1804_v20 }
  0x32   :  { %1517 = vmatpush3.bf16.msra.mxu1 %v1700_v26 }
  0x33   :  { %164 = vmatmul.mubr.bf16.vlgmr.msra.gmra.mrb[0].mxu0 %v50_v18  ;;  %1518 = vmatprep.subr.bf16.mxu1 %v1804_v20 }
  0x34   :  { %1540 = vmatprep.mubr.msk.bf16.mxu0 %vm1805_vm0, %v1804_v20  ;;  %1525 = vmatpush3.bf16.msra.mxu0 %v1702_v3 }
  0x35   :  { %1526 = vmatprep.subr.bf16.mxu0 %v1804_v20 }
  0x36   :  { %1519 = vmatpush3.bf16.msra.mxu1 %v1701_v27 }
  0x37   :  { %1544 = vmatprep.subr.bf16.mxu1 %v1804_v20 }
  0x38   :  { %1527 = vmatpush3.bf16.msra.mxu0 %v1703_v4 }
  0x39   :  { %1528 = vmatprep.subr.bf16.mxu0 %v1804_v20 }
  0x3c   :  { %1529 = vmatpush3.bf16.msra.mxu0 %v1704_v5 }
  0x3d   :  { %1530 = vmatprep.subr.bf16.mxu0 %v1804_v20 }
  0x40   :  { %1531 = vmatpush3.bf16.msra.mxu0 %v1705_v6 }
  0x41   :  { %1532 = vmatprep.subr.bf16.mxu0 %v1804_v20 }
  0x44   :  { %1533 = vmatpush3.bf16.msra.mxu0 %v1706_v7 }
  0x45   :  { %1534 = vmatprep.subr.bf16.mxu0 %v1804_v20 }
  0x48   :  { %1535 = vmatpush3.bf16.msra.mxu0 %v1707_v8 }
  0x49   :  { %1536 = vmatprep.subr.bf16.mxu0 %v1804_v20 }
  0x4c   :  { %1537 = vmatpush3.bf16.msra.mxu0 %v1708_v9 }
  0x4d   :  { %1538 = vmatprep.subr.bf16.mxu0 %v1804_v20 }
  0x50   :  { %1539 = vmatpush3.bf16.msra.mxu0 %v1709_v10 }
  0x51   :  { %1564 = vmatprep.subr.bf16.mxu0 %v1804_v20 }
 0x106   :  { %v1855_v28 = vpop.f32.mrb[0].mxu0 }
 0x107   :  { %v167_v29 = vpop.f32.mrb[1].mxu0  ;;  %v172_v11 = vrot.slane %v1855_v28, 4  ;;  %v187_v12 = vmul.f32 %v1855_v28, %v1855_v28 }
 0x108   :  { %v178_v30 = vrot.slane %v167_v29, 4  ;;  %v188_v31 = vmul.f32 %v167_v29, %v167_v29  ;;  %v169_v32 = vpop.f32.mrb[2].mxu0 }
 0x109   :  { %v170_v33 = vpop.f32.mrb[3].mxu0  ;;  %v173_v13 = vadd.f32 %v172_v11, %v1855_v28  ;;  %v189_v14 = vrot.slane %v187_v12, 4 }
 0x10a   :  { %v179_v34 = vadd.f32 %v178_v30, %v167_v29  ;;  %v195_v35 = vrot.slane %v188_v31, 4 }
 0x10b   :  { %v174_v15 = vrot.slane %v173_v13, 2  ;;  %v190_v16 = vadd.f32 %v189_v14, %v187_v12 }
 0x10c   :  { %v180_v36 = vrot.slane %v179_v34, 2  ;;  %v196_v37 = vadd.f32 %v195_v35, %v188_v31 }
 0x10d   :  { %v175_v17 = vadd.f32 %v174_v15, %v173_v13  ;;  %v191_v18 = vrot.slane %v190_v16, 2 }
 0x10e   :  { %v181_v38 = vadd.f32 %v180_v36, %v179_v34  ;;  %v197_v39 = vrot.slane %v196_v37, 2 }
 0x10f   :  { %v176_v19 = vrot.slane %v175_v17, 1  ;;  %v192_v21 = vadd.f32 %v191_v18, %v190_v16  ;;  %v1712_v18 = vld [vmem:[#allocation2 + $0x120] ss:$8 sps:$4 sm:$0xff]  }
 0x110   :  { %v182_v40 = vrot.slane %v181_v38, 1  ;;  %v198_v41 = vadd.f32 %v197_v39, %v196_v37 }
 0x111   :  { %v177_v22 = vadd.f32 %v176_v19, %v175_v17  ;;  %v193_v23 = vrot.slane %v192_v21, 1  ;;  %v1710_v17 = vld [vmem:[#allocation2 + $0x100] ss:$8 sps:$4 sm:$0xff]   ;;  %v1713_v19 = vld [vmem:[#allocation2 + $0x130] ss:$8 sps:$4 sm:$0xff]  }
 0x112   :  { %v183_v42 = vadd.f32 %v182_v40, %v181_v38  ;;  %v199_v43 = vrot.slane %v198_v41, 1 }
 0x113   :  { %v185_v24 = vmul.f32 0.125, %v177_v22  ;;  %v194_v25 = vadd.f32 %v193_v23, %v192_v21  ;;  %v1714_v21 = vld [vmem:[#allocation2 + $0x140] ss:$8 sps:$4 sm:$0xff]   ;;  %v1715_v22 = vld [vmem:[#allocation2 + $0x150] ss:$8 sps:$4 sm:$0xff]  }
 0x114   :  { %v186_v44 = vmul.f32 0.125, %v183_v42  ;;  %v200_v45 = vadd.f32 %v199_v43, %v198_v41  ;;  %v1716_v23 = vld [vmem:[#allocation2 + $0x160] ss:$8 sps:$4 sm:$0xff]  }
 0x115   :  { %v201_v26 = vmul.f32 0.125, %v194_v25  ;;  %v203_v27 = vmul.f32 %v185_v24, %v185_v24 }
 0x116   :  { %v202_v46 = vmul.f32 0.125, %v200_v45  ;;  %v204_v47 = vmul.f32 %v186_v44, %v186_v44 }
 0x118   :  { %v206_v48 = vsub.f32 %v202_v46, %v204_v47 }
 0x11a   :  { %v208_v49 = vmax.f32 %v206_v48, 0.0 }
 0x11c   :  { %v210_v50 = vadd.f32 1e-05, %v208_v49 }
 0x11e   :  { %1758 = vrsqrt.f32 %v210_v50 }
 0x128   :  { %v1759_v54 = vpop.eup %1758 }
 0x129   :  { %v214_v56 = vmul.f32 %v1759_v54, %v1862_v53 }
 0x12b   :  { %v216_v57 = vmul.f32 %v214_v56, %v186_v44  ;;  %v232_v59 = vrot.slane %v214_v56, %v1865_v55 }
 0x12d   :  { %v220_v60 = vrot.slane %v216_v57, 7  ;;  %v234_v62 = vmul.f32 %v232_v59, %v167_v29  ;;  %v205_v29 = vsub.f32 %v201_v26, %v203_v27  ;;  %v1891_v57 = vld [vmem:[%s2006_s2] sm:$0xff] }
 0x12f   :  { %v224_v61 = vsub.f32 %v1862_v53, %v220_v60  ;;  %v207_v31 = vmax.f32 %v205_v29, 0.0 }
 0x131   :  { %v242_v63 = vrot.slane %v224_v61, %v1869_v58  ;;  %v209_v39 = vadd.f32 1e-05, %v207_v31 }
 0x133   :  { %v244_v0 = vadd.f32 %v242_v63, %v234_v62  ;;  %1760 = vrsqrt.f32 %v209_v39 }
 0x135   :  { %v245_v1 = vmax.f32 %v244_v0, 0.0  ;;  %v1895_v0 = vsub.s32 2, %v1857_v52 }
 0x137   :  { %v263_v2 = vpack.c.bf16 %v245_v1, %v245_v1 }
 0x139   :  { %1521 = vmatmul.mubr.bf16.vlgmr.msra.gmra.mrb[0].mxu1 %v263_v2 }
 0x13a   :  { %1560 = vmatprep.mubr.msk.bf16.mxu1 %vm1805_vm0, %v1804_v20  ;;  %1545 = vmatpush3.bf16.msra.mxu1 %v1710_v17 }
 0x13b   :  { %1546 = vmatprep.subr.bf16.mxu1 %v1804_v20 }
 0x13d   :  { %v1761_v56 = vpop.eup %1760 }
 0x13e   :  { %v213_v61 = vmul.f32 %v1761_v56, %v1891_v57 }
 0x140   :  { %v215_v62 = vmul.f32 %v213_v61, %v185_v24  ;;  %v228_v4 = vrot.slane %v213_v61, %v1865_v55  ;;  %v1717_v24 = vld [vmem:[#allocation2 + $0x170] ss:$8 sps:$4 sm:$0xff]  }
 0x142   :  { %v219_v63 = vrot.slane %v215_v62, 7  ;;  %v233_v9 = vmul.f32 %v228_v4, %v1855_v28  ;;  %v1711_v28 = vld [vmem:[#allocation2 + $0x110] ss:$8 sps:$4 sm:$0xff]   ;;  %v1720_v4 = vld [vmem:[#allocation2 + $0x124] ss:$8 sps:$4 sm:$0xff]  }
 0x143   :  { %1547 = vmatpush3.bf16.msra.mxu1 %v1711_v28 }
 0x144   :  { %v223_v2 = vsub.f32 %v1891_v57, %v219_v63  ;;  %1548 = vmatprep.subr.bf16.mxu1 %v1804_v20 }
 0x146   :  { %v238_v7 = vrot.slane %v223_v2, %v1869_v58  ;;  %v1718_v2 = vld [vmem:[#allocation2 + $0x104] ss:$8 sps:$4 sm:$0xff]  }
 0x147   :  { %1549 = vmatpush3.bf16.msra.mxu1 %v1712_v18 }
 0x148   :  { %v243_v12 = vadd.f32 %v238_v7, %v233_v9  ;;  %1550 = vmatprep.subr.bf16.mxu1 %v1804_v20  ;;  %v1723_v7 = vld [vmem:[#allocation2 + $0x154] ss:$8 sps:$4 sm:$0xff]  }
 0x149   :  { %v1725_v9 = vld [vmem:[#allocation2 + $0x174] ss:$8 sps:$4 sm:$0xff]  }
 0x14b   :  { %1551 = vmatpush3.bf16.msra.mxu1 %v1713_v19 }
 0x14c   :  { %1552 = vmatprep.subr.bf16.mxu1 %v1804_v20 }
 0x14f   :  { %1553 = vmatpush3.bf16.msra.mxu1 %v1714_v21 }
 0x150   :  { %1554 = vmatprep.subr.bf16.mxu1 %v1804_v20 }
 0x153   :  { %1555 = vmatpush3.bf16.msra.mxu1 %v1715_v22 }
 0x154   :  { %1556 = vmatprep.subr.bf16.mxu1 %v1804_v20 }
 0x157   :  { %1557 = vmatpush3.bf16.msra.mxu1 %v1716_v23 }
 0x158   :  { %1558 = vmatprep.subr.bf16.mxu1 %v1804_v20 }
 0x15b   :  { %1559 = vmatpush3.bf16.msra.mxu1 %v1717_v24 }
 0x15c   :  { %1584 = vmatprep.subr.bf16.mxu1 %v1804_v20 }
 0x20c   :  { %v346_v30 = vpop.f32.mrb[0].mxu1 }
 0x20d   :  { %v352_v32 = vrot.slane %v346_v30, 4  ;;  %v359_v33 = vmul.f32 %v346_v30, %v346_v30  ;;  %v1522_v34 = vpop.f32.mrb[1].mxu1 }
 0x20e   :  { %v349_v35 = vpop.f32.mrb[2].mxu1 }
 0x20f   :  { %v353_v36 = vadd.f32 %v352_v32, %v346_v30  ;;  %v360_v37 = vrot.slane %v359_v33, 4  ;;  %v1523_v38 = vpop.f32.mrb[3].mxu1 }
 0x211   :  { %v354_v40 = vrot.slane %v353_v36, 2  ;;  %v361_v41 = vadd.f32 %v360_v37, %v359_v33 }
 0x213   :  { %v355_v42 = vadd.f32 %v354_v40, %v353_v36  ;;  %v362_v43 = vrot.slane %v361_v41, 2 }
 0x215   :  { %v356_v44 = vrot.slane %v355_v42, 1  ;;  %v363_v45 = vadd.f32 %v362_v43, %v361_v41 }
 0x217   :  { %v357_v46 = vadd.f32 %v356_v44, %v355_v42  ;;  %v364_v47 = vrot.slane %v363_v45, 1 }
 0x219   :  { %v358_v48 = vmul.f32 0.125, %v357_v46  ;;  %v365_v49 = vadd.f32 %v364_v47, %v363_v45 }
 0x21b   :  { %v366_v50 = vmul.f32 0.125, %v365_v49  ;;  %v367_v51 = vmul.f32 %v358_v48, %v358_v48  ;;  %v517_v49 = vsub.s32 3, %v1857_v52 }
 0x21d   :  { %v368_v54 = vsub.f32 %v366_v50, %v367_v51 }
 0x21f   :  { %v369_v59 = vmax.f32 %v368_v54, 0.0 }
 0x221   :  { %v370_v60 = vadd.f32 1e-05, %v369_v59 }
 0x223   :  { %1762 = vrsqrt.f32 %v370_v60 }
 0x22d   :  { %v1763_v1 = vpop.eup %1762 }
 0x22e   :  { %v372_v3 = vmul.f32 %v1763_v1, %v1891_v57 }
 0x230   :  { %v373_v5 = vmul.f32 %v372_v3, %v358_v48  ;;  %v378_v6 = vrot.slane %v372_v3, %v1895_v0  ;;  %v1719_v3 = vld [vmem:[#allocation2 + $0x114] ss:$8 sps:$4 sm:$0xff]  }
 0x232   :  { %v374_v8 = vsub.f32 %v1862_v53, %v373_v5  ;;  %v379_v10 = vmul.f32 %v378_v6, %v346_v30  ;;  %v1721_v5 = vld [vmem:[#allocation2 + $0x134] ss:$8 sps:$4 sm:$0xff]   ;;  %v1722_v6 = vld [vmem:[#allocation2 + $0x144] ss:$8 sps:$4 sm:$0xff]  }
 0x234   :  { %v383_v11 = vrot.slane %v374_v8, %v1895_v0  ;;  %v1724_v8 = vld [vmem:[#allocation2 + $0x164] ss:$8 sps:$4 sm:$0xff]  }
 0x236   :  { %v384_v13 = vadd.f32 %v383_v11, %v379_v10 }
 0x238   :  { %v385_v14 = vadd.f32 %v384_v13, %v243_v12 }
 0x23a   :  { %v1905_v15 = vmax.f32 %v385_v14, 0.0 }
 0x23c   :  { %v403_v16 = vpack.c.bf16 %v1905_v15, %v1905_v15 }
 0x23e   :  { %1541 = vmatmul.mubr.bf16.vlgmr.msra.gmra.mrb[4].mxu0 %v403_v16 }
 0x23f   :  { %1580 = vmatprep.mubr.msk.bf16.mxu0 %vm1805_vm0, %v1804_v20  ;;  %1565 = vmatpush3.bf16.msra.mxu0 %v1718_v2 }
 0x240   :  { %1566 = vmatprep.subr.bf16.mxu0 %v1804_v20 }
 0x243   :  { %1567 = vmatpush3.bf16.msra.mxu0 %v1719_v3 }
 0x244   :  { %1568 = vmatprep.subr.bf16.mxu0 %v1804_v20 }
 0x247   :  { %1569 = vmatpush3.bf16.msra.mxu0 %v1720_v4 }
 0x248   :  { %1570 = vmatprep.subr.bf16.mxu0 %v1804_v20 }
 0x24b   :  { %1571 = vmatpush3.bf16.msra.mxu0 %v1721_v5 }
 0x24c   :  { %1572 = vmatprep.subr.bf16.mxu0 %v1804_v20 }
 0x24f   :  { %1573 = vmatpush3.bf16.msra.mxu0 %v1722_v6 }
 0x250   :  { %1574 = vmatprep.subr.bf16.mxu0 %v1804_v20 }
 0x253   :  { %1575 = vmatpush3.bf16.msra.mxu0 %v1723_v7 }
 0x254   :  { %1576 = vmatprep.subr.bf16.mxu0 %v1804_v20 }
 0x257   :  { %1577 = vmatpush3.bf16.msra.mxu0 %v1724_v8 }
 0x258   :  { %1578 = vmatprep.subr.bf16.mxu0 %v1804_v20 }
 0x25b   :  { %1579 = vmatpush3.bf16.msra.mxu0 %v1725_v9 }
 0x25c   :  { %1604 = vmatprep.subr.bf16.mxu0 %v1804_v20 }
 0x311   :  { %v486_v25 = vpop.f32.mrb[4].mxu0 }
 0x312   :  { %v492_v26 = vrot.slane %v486_v25, 4  ;;  %v499_v27 = vmul.f32 %v486_v25, %v486_v25  ;;  %v1542_v29 = vpop.f32.mrb[5].mxu0 }
 0x313   :  { %v489_v30 = vpop.f32.mrb[6].mxu0 }
 0x314   :  { %v493_v31 = vadd.f32 %v492_v26, %v486_v25  ;;  %v500_v32 = vrot.slane %v499_v27, 4  ;;  %v1543_v33 = vpop.f32.mrb[7].mxu0 }
 0x316   :  { %v494_v34 = vrot.slane %v493_v31, 2  ;;  %v501_v35 = vadd.f32 %v500_v32, %v499_v27 }
 0x318   :  { %v495_v36 = vadd.f32 %v494_v34, %v493_v31  ;;  %v502_v37 = vrot.slane %v501_v35, 2 }
 0x31a   :  { %v496_v38 = vrot.slane %v495_v36, 1  ;;  %v503_v39 = vadd.f32 %v502_v37, %v501_v35  ;;  %v657_v35 = vsub.s32 4, %v1857_v52 }
 0x31c   :  { %v497_v40 = vadd.f32 %v496_v38, %v495_v36  ;;  %v504_v41 = vrot.slane %v503_v39, 1 }
 0x31e   :  { %v498_v42 = vmul.f32 0.125, %v497_v40  ;;  %v505_v43 = vadd.f32 %v504_v41, %v503_v39 }
 0x320   :  { %v506_v44 = vmul.f32 0.125, %v505_v43  ;;  %v507_v45 = vmul.f32 %v498_v42, %v498_v42 }
 0x322   :  { %v508_v46 = vsub.f32 %v506_v44, %v507_v45 }
 0x324   :  { %v509_v47 = vmax.f32 %v508_v46, 0.0 }
 0x326   :  { %v510_v48 = vadd.f32 1e-05, %v509_v47  ;;  %v1726_v47 = vld [vmem:[#allocation2 + $0x180] ss:$8 sps:$4 sm:$0xff]  }
 0x328   :  { %1764 = vrsqrt.f32 %v510_v48  ;;  %v1727_v48 = vld [vmem:[#allocation2 + $0x190] ss:$8 sps:$4 sm:$0xff]  }
 0x332   :  { %v1765_v50 = vpop.eup %1764 }
 0x333   :  { %v512_v51 = vmul.f32 %v1765_v50, %v1891_v57  ;;  %v1729_v50 = vld [vmem:[#allocation2 + $0x1b0] ss:$8 sps:$4 sm:$0xff]  }
 0x335   :  { %v513_v54 = vmul.f32 %v512_v51, %v498_v42  ;;  %v518_v56 = vrot.slane %v512_v51, %v517_v49  ;;  %v1731_v51 = vld [vmem:[#allocation2 + $0x1d0] ss:$8 sps:$4 sm:$0xff]  }
 0x337   :  { %v514_v59 = vsub.f32 %v1862_v53, %v513_v54  ;;  %v519_v60 = vmul.f32 %v518_v56, %v486_v25  ;;  %v1732_v54 = vld [vmem:[#allocation2 + $0x1e0] ss:$8 sps:$4 sm:$0xff]   ;;  %v1733_v56 = vld [vmem:[#allocation2 + $0x1f0] ss:$8 sps:$4 sm:$0xff]  }
 0x339   :  { %v523_v61 = vrot.slane %v514_v59, %v517_v49  ;;  %v1728_v49 = vld [vmem:[#allocation2 + $0x1a0] ss:$8 sps:$4 sm:$0xff]  }
 0x33b   :  { %v524_v62 = vadd.f32 %v523_v61, %v519_v60 }
 0x33d   :  { %v525_v63 = vmax.f32 %v524_v62, 0.0 }
 0x33f   :  { %v543_v1 = vpack.c.bf16 %v525_v63, %v525_v63 }
 0x341   :  { %1561 = vmatmul.mubr.bf16.vlgmr.msra.gmra.mrb[4].mxu1 %v543_v1 }
 0x342   :  { %1600 = vmatprep.mubr.msk.bf16.mxu1 %vm1805_vm0, %v1804_v20  ;;  %1585 = vmatpush3.bf16.msra.mxu1 %v1726_v47 }
 0x343   :  { %1586 = vmatprep.subr.bf16.mxu1 %v1804_v20 }
 0x346   :  { %1587 = vmatpush3.bf16.msra.mxu1 %v1727_v48 }
 0x347   :  { %1588 = vmatprep.subr.bf16.mxu1 %v1804_v20 }
 0x34a   :  { %1589 = vmatpush3.bf16.msra.mxu1 %v1728_v49 }
 0x34b   :  { %1590 = vmatprep.subr.bf16.mxu1 %v1804_v20 }
 0x34e   :  { %1591 = vmatpush3.bf16.msra.mxu1 %v1729_v50 }
 0x34f   :  { %1592 = vmatprep.subr.bf16.mxu1 %v1804_v20 }
 0x414   :  { %v626_v10 = vpop.f32.mrb[4].mxu1 }
 0x415   :  { %v632_v11 = vrot.slane %v626_v10, 4  ;;  %v639_v12 = vmul.f32 %v626_v10, %v626_v10  ;;  %v1562_v13 = vpop.f32.mrb[5].mxu1 }
 0x416   :  { %v629_v14 = vpop.f32.mrb[6].mxu1 }
 0x417   :  { %v633_v16 = vadd.f32 %v632_v11, %v626_v10  ;;  %v640_v17 = vrot.slane %v639_v12, 4  ;;  %v1563_v28 = vpop.f32.mrb[7].mxu1 }
 0x419   :  { %v634_v18 = vrot.slane %v633_v16, 2  ;;  %v641_v19 = vadd.f32 %v640_v17, %v639_v12 }
 0x41b   :  { %v635_v21 = vadd.f32 %v634_v18, %v633_v16  ;;  %v642_v22 = vrot.slane %v641_v19, 2 }
 0x41d   :  { %v636_v23 = vrot.slane %v635_v21, 1  ;;  %v643_v24 = vadd.f32 %v642_v22, %v641_v19  ;;  %v797_v19 = vsub.s32 5, %v1857_v52 }
 0x41f   :  { %v637_v25 = vadd.f32 %v636_v23, %v635_v21  ;;  %v644_v26 = vrot.slane %v643_v24, 1 }
 0x421   :  { %v638_v27 = vmul.f32 0.125, %v637_v25  ;;  %v645_v29 = vadd.f32 %v644_v26, %v643_v24 }
 0x423   :  { %v646_v30 = vmul.f32 0.125, %v645_v29  ;;  %v647_v31 = vmul.f32 %v638_v27, %v638_v27 }
 0x425   :  { %v648_v32 = vsub.f32 %v646_v30, %v647_v31 }
 0x427   :  { %v649_v33 = vmax.f32 %v648_v32, 0.0  ;;  %v1734_v32 = vld [vmem:[#allocation2 + $0x184] ss:$8 sps:$4 sm:$0xff]  }
 0x429   :  { %v650_v34 = vadd.f32 1e-05, %v649_v33  ;;  %v1735_v33 = vld [vmem:[#allocation2 + $0x194] ss:$8 sps:$4 sm:$0xff]  }
 0x42b   :  { %1766 = vrsqrt.f32 %v650_v34  ;;  %v1736_v34 = vld [vmem:[#allocation2 + $0x1a4] ss:$8 sps:$4 sm:$0xff]  }
 0x435   :  { %v1767_v36 = vpop.eup %1766 }
 0x436   :  { %v652_v37 = vmul.f32 %v1767_v36, %v1891_v57  ;;  %v1738_v36 = vld [vmem:[#allocation2 + $0x1c4] ss:$8 sps:$4 sm:$0xff]  }
 0x438   :  { %v653_v38 = vmul.f32 %v652_v37, %v638_v27  ;;  %v658_v39 = vrot.slane %v652_v37, %v657_v35  ;;  %v1739_v37 = vld [vmem:[#allocation2 + $0x1d4] ss:$8 sps:$4 sm:$0xff]  }
 0x43a   :  { %v654_v40 = vsub.f32 %v1862_v53, %v653_v38  ;;  %v659_v41 = vmul.f32 %v658_v39, %v626_v10  ;;  %v1740_v38 = vld [vmem:[#allocation2 + $0x1e4] ss:$8 sps:$4 sm:$0xff]   ;;  %v1741_v39 = vld [vmem:[#allocation2 + $0x1f4] ss:$8 sps:$4 sm:$0xff]  }
 0x43c   :  { %v663_v42 = vrot.slane %v654_v40, %v657_v35  ;;  %v1737_v35 = vld [vmem:[#allocation2 + $0x1b4] ss:$8 sps:$4 sm:$0xff]  }
 0x43e   :  { %v664_v43 = vadd.f32 %v663_v42, %v659_v41 }
 0x440   :  { %v665_v44 = vadd.f32 %v664_v43, %v1905_v15  ;;  %v1730_v15 = vld [vmem:[#allocation2 + $0x1c0] ss:$8 sps:$4 sm:$0xff]  }
 0x441   :  { %1593 = vmatpush3.bf16.msra.mxu1 %v1730_v15 }
 0x442   :  { %v666_v45 = vmax.f32 %v665_v44, 0.0  ;;  %1594 = vmatprep.subr.bf16.mxu1 %v1804_v20 }
 0x444   :  { %v683_v46 = vpack.c.bf16 %v666_v45, %v666_v45 }
 0x445   :  { %1595 = vmatpush3.bf16.msra.mxu1 %v1731_v51 }
 0x446   :  { %1581 = vmatmul.mubr.bf16.vlgmr.msra.gmra.mrb[8].mxu0 %v683_v46  ;;  %1596 = vmatprep.subr.bf16.mxu1 %v1804_v20 }
 0x447   :  { %1620 = vmatprep.mubr.msk.bf16.mxu0 %vm1805_vm0, %v1804_v20  ;;  %1605 = vmatpush3.bf16.msra.mxu0 %v1734_v32 }
 0x448   :  { %1606 = vmatprep.subr.bf16.mxu0 %v1804_v20 }
 0x449   :  { %1597 = vmatpush3.bf16.msra.mxu1 %v1732_v54 }
 0x44a   :  { %1598 = vmatprep.subr.bf16.mxu1 %v1804_v20 }
 0x44b   :  { %1607 = vmatpush3.bf16.msra.mxu0 %v1735_v33 }
 0x44c   :  { %1608 = vmatprep.subr.bf16.mxu0 %v1804_v20 }
 0x44d   :  { %1599 = vmatpush3.bf16.msra.mxu1 %v1733_v56 }
 0x44e   :  { %1624 = vmatprep.subr.bf16.mxu1 %v1804_v20 }
 0x44f   :  { %1609 = vmatpush3.bf16.msra.mxu0 %v1736_v34 }
 0x450   :  { %1610 = vmatprep.subr.bf16.mxu0 %v1804_v20 }
 0x453   :  { %1611 = vmatpush3.bf16.msra.mxu0 %v1737_v35 }
 0x454   :  { %1612 = vmatprep.subr.bf16.mxu0 %v1804_v20 }
 0x457   :  { %1613 = vmatpush3.bf16.msra.mxu0 %v1738_v36 }
 0x458   :  { %1614 = vmatprep.subr.bf16.mxu0 %v1804_v20 }
 0x45b   :  { %1615 = vmatpush3.bf16.msra.mxu0 %v1739_v37 }
 0x45c   :  { %1616 = vmatprep.subr.bf16.mxu0 %v1804_v20 }
 0x45f   :  { %1617 = vmatpush3.bf16.msra.mxu0 %v1740_v38 }
 0x460   :  { %1618 = vmatprep.subr.bf16.mxu0 %v1804_v20 }
 0x463   :  { %1619 = vmatpush3.bf16.msra.mxu0 %v1741_v39 }
 0x464   :  { %1644 = vmatprep.subr.bf16.mxu0 %v1804_v20 }
 0x519   :  { %v766_v59 = vpop.f32.mrb[8].mxu0 }
 0x51a   :  { %v772_v60 = vrot.slane %v766_v59, 4  ;;  %v779_v61 = vmul.f32 %v766_v59, %v766_v59  ;;  %v1582_v62 = vpop.f32.mrb[9].mxu0 }
 0x51b   :  { %v769_v63 = vpop.f32.mrb[10].mxu0 }
 0x51c   :  { %v773_v1 = vadd.f32 %v772_v60, %v766_v59  ;;  %v780_v2 = vrot.slane %v779_v61, 4  ;;  %v1583_v3 = vpop.f32.mrb[11].mxu0 }
 0x51e   :  { %v774_v4 = vrot.slane %v773_v1, 2  ;;  %v781_v5 = vadd.f32 %v780_v2, %v779_v61 }
 0x520   :  { %v775_v6 = vadd.f32 %v774_v4, %v773_v1  ;;  %v782_v7 = vrot.slane %v781_v5, 2  ;;  %v937_v4 = vsub.s32 6, %v1857_v52 }
 0x522   :  { %v776_v8 = vrot.slane %v775_v6, 1  ;;  %v783_v9 = vadd.f32 %v782_v7, %v781_v5  ;;  %v1967_v7 = vld [vmem:[%s2006_s2 + $0x10] sm:$0xff] }
 0x524   :  { %v777_v10 = vadd.f32 %v776_v8, %v775_v6  ;;  %v784_v11 = vrot.slane %v783_v9, 1 }
 0x526   :  { %v778_v12 = vmul.f32 0.125, %v777_v10  ;;  %v785_v13 = vadd.f32 %v784_v11, %v783_v9  ;;  %v948_v10 = vrot.slane %v1967_v7, %v1869_v58 }
 0x528   :  { %v786_v14 = vmul.f32 0.125, %v785_v13  ;;  %v787_v16 = vmul.f32 %v778_v12, %v778_v12 }
 0x52a   :  { %v788_v17 = vsub.f32 %v786_v14, %v787_v16 }
 0x52c   :  { %v789_v28 = vmax.f32 %v788_v17, 0.0 }
 0x52e   :  { %v790_v18 = vadd.f32 1e-05, %v789_v28 }
 0x530   :  { %1768 = vrsqrt.f32 %v790_v18 }
 0x53a   :  { %v1769_v21 = vpop.eup %1768 }
 0x53b   :  { %v792_v22 = vmul.f32 %v1769_v21, %v1891_v57  ;;  %v1743_v21 = vld [vmem:[#allocation2 + $0x210] ss:$8 sps:$4 sm:$0xff]  }
 0x53d   :  { %v793_v23 = vmul.f32 %v792_v22, %v778_v12  ;;  %v798_v24 = vrot.slane %v792_v22, %v797_v19  ;;  %v1744_v22 = vld [vmem:[#allocation2 + $0x220] ss:$8 sps:$4 sm:$0xff]  }
 0x53f   :  { %v794_v25 = vsub.f32 %v1862_v53, %v793_v23  ;;  %v799_v26 = vmul.f32 %v798_v24, %v766_v59  ;;  %v1745_v23 = vld [vmem:[#allocation2 + $0x230] ss:$8 sps:$4 sm:$0xff]   ;;  %v1746_v24 = vld [vmem:[#allocation2 + $0x240] ss:$8 sps:$4 sm:$0xff]  }
 0x541   :  { %v803_v27 = vrot.slane %v794_v25, %v797_v19  ;;  %v1742_v19 = vld [vmem:[#allocation2 + $0x200] ss:$8 sps:$4 sm:$0xff]   ;;  %v1747_v25 = vld [vmem:[#allocation2 + $0x250] ss:$8 sps:$4 sm:$0xff]  }
 0x543   :  { %v1949_v29 = vadd.f32 %v803_v27, %v799_v26  ;;  %v1748_v26 = vld [vmem:[#allocation2 + $0x260] ss:$8 sps:$4 sm:$0xff]   ;;  %v1749_v27 = vld [vmem:[#allocation2 + $0x270] ss:$8 sps:$4 sm:$0xff]  }
 0x545   :  { %v805_v30 = vmax.f32 %v1949_v29, 0.0  ;;  %v949_v14 = vmul.f32 %v948_v10, %v1949_v29 }
 0x547   :  { %v823_v31 = vpack.c.bf16 %v805_v30, %v805_v30 }
 0x549   :  { %1601 = vmatmul.mubr.bf16.vlgmr.msra.gmra.mrb[8].mxu1 %v823_v31 }
 0x54a   :  { %1640 = vmatprep.mubr.msk.bf16.mxu1 %vm1805_vm0, %v1804_v20  ;;  %1625 = vmatpush3.bf16.msra.mxu1 %v1742_v19 }
 0x54b   :  { %1626 = vmatprep.subr.bf16.mxu1 %v1804_v20 }
 0x54e   :  { %1627 = vmatpush3.bf16.msra.mxu1 %v1743_v21 }
 0x54f   :  { %1628 = vmatprep.subr.bf16.mxu1 %v1804_v20 }
 0x552   :  { %1629 = vmatpush3.bf16.msra.mxu1 %v1744_v22 }
 0x553   :  { %1630 = vmatprep.subr.bf16.mxu1 %v1804_v20 }
 0x556   :  { %1631 = vmatpush3.bf16.msra.mxu1 %v1745_v23 }
 0x557   :  { %1632 = vmatprep.subr.bf16.mxu1 %v1804_v20 }
 0x55a   :  { %1633 = vmatpush3.bf16.msra.mxu1 %v1746_v24 }
 0x55b   :  { %1634 = vmatprep.subr.bf16.mxu1 %v1804_v20 }
 0x55e   :  { %1635 = vmatpush3.bf16.msra.mxu1 %v1747_v25 }
 0x55f   :  { %1636 = vmatprep.subr.bf16.mxu1 %v1804_v20 }
 0x562   :  { %1637 = vmatpush3.bf16.msra.mxu1 %v1748_v26 }
 0x563   :  { %1638 = vmatprep.subr.bf16.mxu1 %v1804_v20 }
 0x566   :  { %1639 = vmatpush3.bf16.msra.mxu1 %v1749_v27 }
 0x61c   :  { %v906_v40 = vpop.f32.mrb[8].mxu1 }
 0x61d   :  { %v912_v41 = vrot.slane %v906_v40, 4  ;;  %v919_v42 = vmul.f32 %v906_v40, %v906_v40  ;;  %v1602_v43 = vpop.f32.mrb[9].mxu1 }
 0x61e   :  { %v909_v44 = vpop.f32.mrb[10].mxu1 }
 0x61f   :  { %v913_v45 = vadd.f32 %v912_v41, %v906_v40  ;;  %v920_v46 = vrot.slane %v919_v42, 4  ;;  %v1603_v47 = vpop.f32.mrb[11].mxu1 }
 0x621   :  { %v914_v48 = vrot.slane %v913_v45, 2  ;;  %v921_v49 = vadd.f32 %v920_v46, %v919_v42 }
 0x623   :  { %v915_v50 = vadd.f32 %v914_v48, %v913_v45  ;;  %v922_v15 = vrot.slane %v921_v49, 2 }
 0x625   :  { %v916_v51 = vrot.slane %v915_v50, 1  ;;  %v923_v54 = vadd.f32 %v922_v15, %v921_v49 }
 0x627   :  { %v917_v56 = vadd.f32 %v916_v51, %v915_v50  ;;  %v924_v59 = vrot.slane %v923_v54, 1  ;;  %v1082_v51 = vsub.s32 7, %v1857_v52  ;;  %v1752_v52 = vld [vmem:[#allocation2 + $0x224] ss:$8 sps:$4 sm:$0xff]  }
 0x629   :  { %v918_v60 = vmul.f32 0.125, %v917_v56  ;;  %v925_v61 = vadd.f32 %v924_v59, %v923_v54 }
 0x62b   :  { %v926_v62 = vmul.f32 0.125, %v925_v61  ;;  %v927_v63 = vmul.f32 %v918_v60, %v918_v60 }
 0x62d   :  { %v928_v1 = vsub.f32 %v926_v62, %v927_v63 }
 0x62f   :  { %v929_v2 = vmax.f32 %v928_v1, 0.0 }
 0x631   :  { %v930_v3 = vadd.f32 1e-05, %v929_v2 }
 0x633   :  { %1770 = vrsqrt.f32 %v930_v3 }
 0x63d   :  { %v1771_v5 = vpop.eup %1770 }
 0x63e   :  { %v932_v6 = vmul.f32 %v1771_v5, %v1891_v57  ;;  %v1751_v5 = vld [vmem:[#allocation2 + $0x214] ss:$8 sps:$4 sm:$0xff]  }
 0x640   :  { %v933_v8 = vmul.f32 %v932_v6, %v918_v60  ;;  %v938_v9 = vrot.slane %v932_v6, %v937_v4  ;;  %v1755_v6 = vld [vmem:[#allocation2 + $0x254] ss:$8 sps:$4 sm:$0xff]  }
 0x642   :  { %v934_v11 = vsub.f32 %v1862_v53, %v933_v8  ;;  %v939_v12 = vmul.f32 %v938_v9, %v906_v40  ;;  %v1756_v8 = vld [vmem:[#allocation2 + $0x264] ss:$8 sps:$4 sm:$0xff]   ;;  %v1757_v9 = vld [vmem:[#allocation2 + $0x274] ss:$8 sps:$4 sm:$0xff]  }
 0x644   :  { %v943_v13 = vrot.slane %v934_v11, %v937_v4  ;;  %v1750_v4 = vld [vmem:[#allocation2 + $0x204] ss:$8 sps:$4 sm:$0xff]  }
 0x646   :  { %v944_v16 = vadd.f32 %v943_v13, %v939_v12 }
 0x648   :  { %v950_v17 = vadd.f32 %v949_v14, %v944_v16 }
 0x64a   :  { %v951_v28 = vmax.f32 %v950_v17, 0.0 }
 0x64c   :  { %v968_v18 = vpack.c.bf16 %v951_v28, %v951_v28 }
 0x64e   :  { %1621 = vmatmul.mubr.bf16.vlgmr.msra.gmra.mrb[12].mxu0 %v968_v18 }
 0x64f   :  { %1660 = vmatprep.mubr.msk.bf16.mxu0 %vm1805_vm0, %v1804_v20  ;;  %1645 = vmatpush3.bf16.msra.mxu0 %v1750_v4 }
 0x650   :  { %1646 = vmatprep.subr.bf16.mxu0 %v1804_v20 }
 0x653   :  { %1647 = vmatpush3.bf16.msra.mxu0 %v1751_v5 }
 0x654   :  { %1648 = vmatprep.subr.bf16.mxu0 %v1804_v20 }
 0x657   :  { %1649 = vmatpush3.bf16.msra.mxu0 %v1752_v52 }
 0x658   :  { %1650 = vmatprep.subr.bf16.mxu0 %v1804_v20 }
 0x721   :  { %v1051_v29 = vpop.f32.mrb[12].mxu0 }
 0x722   :  { %v1057_v30 = vrot.slane %v1051_v29, 4  ;;  %v1064_v31 = vmul.f32 %v1051_v29, %v1051_v29  ;;  %v1622_v32 = vpop.f32.mrb[13].mxu0 }
 0x723   :  { %v1054_v33 = vpop.f32.mrb[14].mxu0 }
 0x724   :  { %v1058_v34 = vadd.f32 %v1057_v30, %v1051_v29  ;;  %v1065_v35 = vrot.slane %v1064_v31, 4  ;;  %v1623_v36 = vpop.f32.mrb[15].mxu0 }
 0x725   :  { %v32_v36 = vld [vmem:[%s2006_s2 + $0x18] sm:$0xff] }
 0x726   :  { %v1059_v37 = vrot.slane %v1058_v34, 2  ;;  %v1066_v38 = vadd.f32 %v1065_v35, %v1064_v31 }
 0x728   :  { %v1060_v39 = vadd.f32 %v1059_v37, %v1058_v34  ;;  %v1067_v40 = vrot.slane %v1066_v38, 2 }
 0x72a   :  { %v1061_v41 = vrot.slane %v1060_v39, 1  ;;  %v1068_v42 = vadd.f32 %v1067_v40, %v1066_v38 }
 0x72c   :  { %v1062_v43 = vadd.f32 %v1061_v41, %v1060_v39  ;;  %v1069_v44 = vrot.slane %v1068_v42, 1  ;;  %v1233_v39 = vrot.slane %v32_v36, %v1869_v58 }
 0x72e   :  { %v1063_v45 = vmul.f32 0.125, %v1062_v43  ;;  %v1070_v46 = vadd.f32 %v1069_v44, %v1068_v42 }
 0x730   :  { %v1071_v47 = vmul.f32 0.125, %v1070_v46  ;;  %v1072_v48 = vmul.f32 %v1063_v45, %v1063_v45 }
 0x732   :  { %v1073_v49 = vsub.f32 %v1071_v47, %v1072_v48  ;;  %v1257_v48 = vrot.slane %v1967_v7, %v1895_v0 }
 0x734   :  { %v1074_v50 = vmax.f32 %v1073_v49, 0.0 }
 0x736   :  { %v1075_v15 = vadd.f32 1e-05, %v1074_v50 }
 0x738   :  { %1772 = vrsqrt.f32 %v1075_v15 }
 0x742   :  { %v1773_v54 = vpop.eup %1772 }
 0x743   :  { %v1077_v56 = vmul.f32 %v1773_v54, %v1891_v57  ;;  %v1753_v57 = vld [vmem:[#allocation2 + $0x234] ss:$8 sps:$4 sm:$0xff]  }
 0x744   :  { %1651 = vmatpush3.bf16.msra.mxu0 %v1753_v57 }
 0x745   :  { %v1078_v59 = vmul.f32 %v1077_v56, %v1063_v45  ;;  %v1083_v60 = vrot.slane %v1077_v56, %v1082_v51  ;;  %1652 = vmatprep.subr.bf16.mxu0 %v1804_v20 }
 0x747   :  { %v1079_v61 = vsub.f32 %v1862_v53, %v1078_v59  ;;  %v1084_v62 = vmul.f32 %v1083_v60, %v1051_v29  ;;  %v1754_v53 = vld [vmem:[#allocation2 + $0x244] ss:$8 sps:$4 sm:$0xff]  }
 0x748   :  { %1653 = vmatpush3.bf16.msra.mxu0 %v1754_v53 }
 0x749   :  { %v1088_v63 = vrot.slane %v1079_v61, %v1082_v51  ;;  %1654 = vmatprep.subr.bf16.mxu0 %v1804_v20 }
 0x74b   :  { %v1089_v1 = vadd.f32 %v1088_v63, %v1084_v62 }
 0x74c   :  { %1655 = vmatpush3.bf16.msra.mxu0 %v1755_v6 }
 0x74d   :  { %v1090_v2 = vmax.f32 %v1089_v1, 0.0  ;;  %1656 = vmatprep.subr.bf16.mxu0 %v1804_v20  ;;  %v1234_v43 = vmul.f32 %v1233_v39, %v1089_v1 }
 0x74f   :  { %v1108_v3 = vpack.c.bf16 %v1090_v2, %v1090_v2 }
 0x750   :  { %1657 = vmatpush3.bf16.msra.mxu0 %v1756_v8 }
 0x751   :  { %1641 = vmatmul.mubr.bf16.vlgmr.msra.gmra.mrb[12].mxu1 %v1108_v3  ;;  %1658 = vmatprep.subr.bf16.mxu0 %v1804_v20 }
 0x754   :  { %1659 = vmatpush3.bf16.msra.mxu0 %v1757_v9 }
 0x824   :  { %v1191_v10 = vpop.f32.mrb[12].mxu1 }
 0x825   :  { %v1197_v11 = vrot.slane %v1191_v10, 4  ;;  %v1204_v12 = vmul.f32 %v1191_v10, %v1191_v10  ;;  %v1642_v13 = vpop.f32.mrb[13].mxu1 }
 0x826   :  { %v1194_v14 = vpop.f32.mrb[14].mxu1 }
 0x827   :  { %v1198_v16 = vadd.f32 %v1197_v11, %v1191_v10  ;;  %v1205_v17 = vrot.slane %v1204_v12, 4  ;;  %v1643_v28 = vpop.f32.mrb[15].mxu1 }
 0x829   :  { %v1199_v18 = vrot.slane %v1198_v16, 2  ;;  %v1206_v19 = vadd.f32 %v1205_v17, %v1204_v12 }
 0x82b   :  { %v1200_v21 = vadd.f32 %v1199_v18, %v1198_v16  ;;  %v1207_v22 = vrot.slane %v1206_v19, 2 }
 0x82d   :  { %v1201_v23 = vrot.slane %v1200_v21, 1  ;;  %v1208_v24 = vadd.f32 %v1207_v22, %v1206_v19 }
 0x82f   :  { %v1202_v25 = vadd.f32 %v1201_v23, %v1200_v21  ;;  %v1209_v26 = vrot.slane %v1208_v24, 1 }
 0x831   :  { %v1203_v27 = vmul.f32 0.125, %v1202_v25  ;;  %v1210_v29 = vadd.f32 %v1209_v26, %v1208_v24 }
 0x833   :  { %v1211_v20 = vmul.f32 0.125, %v1210_v29  ;;  %v1212_v30 = vmul.f32 %v1203_v27, %v1203_v27 }
 0x835   :  { %v1213_v31 = vsub.f32 %v1211_v20, %v1212_v30 }
 0x837   :  { %v1214_v32 = vmax.f32 %v1213_v31, 0.0 }
 0x839   :  { %v1215_v33 = vadd.f32 1e-05, %v1214_v32 }
 0x83b   :  { %1774 = vrsqrt.f32 %v1215_v33 }
 0x845   :  { %v1775_v34 = vpop.eup %1774 }
 0x846   :  { %v1217_v35 = vmul.f32 %v1775_v34, %v1967_v7 }
 0x848   :  { %v1218_v37 = vmul.f32 %v1217_v35, %v1203_v27  ;;  %v1223_v38 = vrot.slane %v1217_v35, %v1865_v55 }
 0x84a   :  { %v1219_v40 = vsub.f32 %v32_v36, %v1218_v37  ;;  %v1224_v41 = vmul.f32 %v1223_v38, %v1191_v10 }
 0x84c   :  { %v1228_v42 = vrot.slane %v1219_v40, %v1865_v55 }
 0x84e   :  { %v1229_v44 = vadd.f32 %v1228_v42, %v1224_v41 }
 0x850   :  { %v1235_v45 = vadd.f32 %v1234_v43, %v1229_v44 }
 0x852   :  { %v1236_v46 = vmax.f32 %v1235_v45, 0.0 }
 0x854   :  { %v1253_v47 = vpack.c.bf16 %v1236_v46, %v1236_v46 }
 0x856   :  { %1661 = vmatmul.mubr.bf16.vlgmr.msra.gmra.mrb[16].mxu0 %v1253_v47 }
 0x929   :  { %v1340_v49 = vpop.f32.mrb[16].mxu0 }
 0x92a   :  { %v1341_v50 = vadd.f32 %v1340_v49, %v1257_v48  ;;  %v1662_v15 = vpop.f32.mrb[17].mxu0 }
 0x92b   :  { %v1343_v51 = vpop.f32.mrb[18].mxu0 }
 0x92c   :  { %1346 = vst [vmem:[%s2007_s3] sm:$0xff] %v1341_v50  ;;  %v1663_v58 = vpop.f32.mrb[19].mxu0 }
 0x92d   :  { %1351 = vsyncpa [#allocation3], 1 }

</bundles_post_ra>
